<compile_context>
chip_gen: v6e
topology: v6e:2x2x1
jax: 0.10.0
libtpu: 0.0.40
codegen_flags: <defaults>
</compile_context>

<pallas_src>
import jax
import jax.numpy as jnp
from jax.experimental import pallas as pl
from jax.experimental.pallas import tpu as pltpu


def _rekt_kernel(
    # scalar prefetch (SMEM int32, flattened (B*S,), row-major b*S + t)
    pro_idx_ref, skill_idx_ref,
    # VMEM inputs
    npe_ref, nx_ref, time_embed_ref, ls_state_ref,
    pro_state0_ref, skill_state0_ref,
    wg_ref, bg_ref, w1_ref, b1_ref, w2_ref, b2_ref,
    wsuS_ref, wsuX_ref, bsu_ref,
    # output
    out_ref,
    # scratch
    pro_state_scr, skill_state_scr, last_pro_time_scr, last_skill_time_scr,
):
    B, S = out_ref.shape
    d = time_embed_ref.shape[1]
    n_state_pad = pro_state0_ref.shape[0]            # 8-aligned per-batch stride
    pro_max = last_pro_time_scr.shape[0] // B
    skill_max = last_skill_time_scr.shape[0] // B

    def mm(x, w):
        return jnp.dot(x, w, preferred_element_type=jnp.float32)

    # ---------------- one-time init of the recurrent state ------------------
    for b in range(B):
        pro_state_scr[pl.ds(b * n_state_pad, n_state_pad), :] = pro_state0_ref[...]
        skill_state_scr[pl.ds(b * n_state_pad, n_state_pad), :] = skill_state0_ref[...]

    def _zero_pro(i, c):
        last_pro_time_scr[i] = jnp.int32(0)
        return c

    def _zero_skill(i, c):
        last_skill_time_scr[i] = jnp.int32(0)
        return c

    jax.lax.fori_loop(0, B * pro_max, _zero_pro, 0)
    jax.lax.fori_loop(0, B * skill_max, _zero_skill, 0)

    # ---------------- loop-invariant pieces (hoisted) ------------------------
    lane_iota = jax.lax.broadcasted_iota(jnp.int32, (1, S), 1)      # (1, S)
    bg_b = jnp.broadcast_to(bg_ref[...], (B, 3 * d))
    b1_b = jnp.broadcast_to(b1_ref[...], (B, d))
    b2_b = jnp.broadcast_to(b2_ref[...], (B, 1))
    bsu_b = jnp.broadcast_to(bsu_ref[...], (B, 3 * d))

    all0 = jnp.broadcast_to(ls_state_ref[...], (B, d))
    res0 = jnp.zeros((B, S), jnp.float32)

    def step(t, carry):
        all_state, res = carry

        # -------- scalar phase: all SMEM reads up front --------
        pids = [pro_idx_ref[b * S + t] for b in range(B)]
        sids = [skill_idx_ref[b * S + t] for b in range(B)]
        lpts = [last_pro_time_scr[b * pro_max + pids[b]] for b in range(B)]
        lsts = [last_skill_time_scr[b * skill_max + sids[b]] for b in range(B)]

        # -------- vector phase: only the truly data-dependent gathers --------
        lps = jnp.concatenate(
            [pro_state_scr[pl.ds(b * n_state_pad + lpts[b], 1), :] for b in range(B)], axis=0)
        tg = jnp.concatenate(
            [time_embed_ref[pl.ds(t - lpts[b], 1), :] for b in range(B)], axis=0)
        lss = jnp.concatenate(
            [skill_state_scr[pl.ds(b * n_state_pad + lsts[b], 1), :] for b in range(B)], axis=0)
        stg = jnp.concatenate(
            [time_embed_ref[pl.ds(t - lsts[b], 1), :] for b in range(B)], axis=0)

        npe_t = npe_ref[t]                        # (B, d), hoisted gather (wrapper)
        nx_t = nx_ref[t]                          # (B, d)

        # -------- fused forget gates: one MXU pass --------
        gate_in = jnp.concatenate([lps, tg, lss, stg, all_state], axis=-1)   # (B, 5d)
        gates = jax.nn.sigmoid(mm(gate_in, wg_ref[...]) + bg_b)              # (B, 3d)
        lps_f = lps * gates[:, 0:d]
        lss_f = lss * gates[:, d:2 * d]
        las = all_state * gates[:, 2 * d:3 * d]

        # -------- prediction head: cat4 @ w1, then @ w2 --------
        states3 = jnp.concatenate([las, lps_f, lss_f], axis=-1)              # (B, 3d)
        h = jax.nn.relu(mm(jnp.concatenate([states3, npe_t], axis=-1), w1_ref[...]) + b1_b)
        p = jax.nn.sigmoid(mm(h, w2_ref[...]) + b2_b)                        # (B, 1)
        res = jnp.where(lane_iota == t, p, res)                              # write lane t

        # -------- fused state updates: block-diag + shared-nx matmuls --------
        upd = jnp.tanh(mm(states3, wsuS_ref[...]) + mm(nx_t, wsuX_ref[...]) + bsu_b)
        new_all = las + upd[:, 0:d]
        new_pro = lps_f + upd[:, d:2 * d]
        new_skill = lss_f + upd[:, 2 * d:3 * d]

        # -------- writeback of recurrent state --------
        t32 = jnp.int32(t)
        for b in range(B):
            pro_state_scr[pl.ds(b * n_state_pad + t, 1), :] = new_pro[b:b + 1, :]
            skill_state_scr[pl.ds(b * n_state_pad + t, 1), :] = new_skill[b:b + 1, :]
            last_pro_time_scr[b * pro_max + pids[b]] = t32
            last_skill_time_scr[b * skill_max + sids[b]] = t32

        return new_all, res

    # ---------------- time recurrence, unrolled x2 ----------------------------
    UNROLL = 2
    n_main = (S // UNROLL) * UNROLL

    def body(i, carry):
        t0 = i * UNROLL
        for u in range(UNROLL):
            carry = step(t0 + u, carry)
        return carry

    carry = jax.lax.fori_loop(0, S // UNROLL, body, (all0, res0))
    for t in range(n_main, S):                    # remainder (S = 199 is odd)
        carry = step(t, carry)

    _, res = carry
    out_ref[...] = res


def rekt_forward(params, last_problem, last_skill, last_ans,
                 next_problem, next_skill, next_ans):
    del last_problem, last_skill, last_ans        # unused by the reference forward
    B, S = next_problem.shape
    d = params['pro_embed'].shape[1]
    pro_max = params['pro_embed'].shape[0]
    skill_max = params['skill_embed'].shape[0]
    n_state = params['pro_state'].shape[0]        # 199
    assert S == params['g'].shape[0], "forward's einsum requires seq == 199"
    n_state_pad = ((n_state + 7) // 8) * 8        # 8-aligned per-batch stride

    # integer indices (clamped: Pallas does no VMEM/SMEM bounds checking)
    pro_i = jnp.clip(next_problem.astype(jnp.int32), 0, pro_max - 1)
    skill_i = jnp.clip(next_skill.astype(jnp.int32), 0, skill_max - 1)
    ans_i = jnp.clip(next_ans.astype(jnp.int32), 0, 1)

    # ---- hoisted, data-independent gathers: next_pro_embed / next_X ----
    npe = (params['pro_embed'][pro_i] + params['skill_embed'][skill_i]
           + params['akt_pro_diff'][pro_i] * params['akt_pro_change'][skill_i])     # (B,S,d)
    nx = npe + params['ans_embed'][ans_i]
    npe_seq = jnp.transpose(npe, (1, 0, 2)).astype(jnp.float32)                     # (S,B,d)
    nx_seq = jnp.transpose(nx, (1, 0, 2)).astype(jnp.float32)

    # ---- fused (block-diagonal / N-concatenated) weights, built once ----
    wg = jnp.zeros((5 * d, 3 * d), jnp.float32)
    wg = wg.at[0:2 * d, 0:d].set(params['wpf'])                 # [lps, tg]   -> pro gate
    wg = wg.at[2 * d:4 * d, d:2 * d].set(params['wsf'])         # [lss, stg]  -> skill gate
    wg = wg.at[4 * d:5 * d, 2 * d:3 * d].set(params['waf'][0:d])  # all_state -> all gate
    af_time = params['time_embed'][1:2] @ params['waf'][d:2 * d] + params['baf']    # (1,d)
    bg = jnp.concatenate([params['bpf'], params['bsf'], af_time], axis=1)           # (1,3d)

    wsu_s = jnp.zeros((3 * d, 3 * d), jnp.float32)
    wsu_s = wsu_s.at[0:d, 0:d].set(params['was'][0:d])
    wsu_s = wsu_s.at[d:2 * d, d:2 * d].set(params['wps'][0:d])
    wsu_s = wsu_s.at[2 * d:3 * d, 2 * d:3 * d].set(params['wss'][0:d])
    wsu_x = jnp.concatenate(
        [params['was'][d:2 * d], params['wps'][d:2 * d], params['wss'][d:2 * d]], axis=1)  # (d,3d)
    bsu = jnp.concatenate([params['bas'], params['bps'], params['bss']], axis=1)    # (1,3d)

    pad = jnp.zeros((n_state_pad - n_state, d), jnp.float32)
    pro_state0 = jnp.concatenate([params['pro_state'], pad], axis=0)       # (n_state_pad, d)
    skill_state0 = jnp.concatenate([params['skill_state'], pad], axis=0)

    weights = [npe_seq, nx_seq, params['time_embed'], params['ls_state'],
               pro_state0, skill_state0,
               wg, bg, params['w1'], params['b1'], params['w2'], params['b2'],
               wsu_s, wsu_x, bsu]

    def full_spec(shape):
        nd = len(shape)
        return pl.BlockSpec(shape, lambda i, p, s, _nd=nd: (0,) * _nd)

    out = pl.pallas_call(
        _rekt_kernel,
        out_shape=jax.ShapeDtypeStruct((B, S), jnp.float32),
        grid_spec=pltpu.PrefetchScalarGridSpec(
            num_scalar_prefetch=2,
            grid=(1,),
            in_specs=[full_spec(w.shape) for w in weights],
            out_specs=pl.BlockSpec((B, S), lambda i, p, s: (0, 0)),
            scratch_shapes=[
                pltpu.VMEM((B * n_state_pad, d), jnp.float32),   # pro_state table
                pltpu.VMEM((B * n_state_pad, d), jnp.float32),   # skill_state table
                pltpu.SMEM((B * pro_max,), jnp.int32),           # last_pro_time
                pltpu.SMEM((B * skill_max,), jnp.int32),         # last_skill_time
            ],
        ),
        compiler_params=pltpu.CompilerParams(dimension_semantics=("arbitrary",)),
    )(pro_i.reshape(-1), skill_i.reshape(-1), *weights)

    # scale by sigmoid(diag(g)) in the wrapper (one vectorized op)
    return out * jax.nn.sigmoid(jnp.diagonal(params['g']))[None, :]    # (B, S)


def rekt_reference(params, next_problem, next_skill, next_ans):
    """Pure-JAX reference (mirrors the torch forward, eval mode)."""
    B, S = next_problem.shape
    d = params['pro_embed'].shape[1]
    npe = (params['pro_embed'][next_problem]
           + params['skill_embed'][next_skill]
           + params['akt_pro_diff'][next_problem] * params['akt_pro_change'][next_skill])
    next_x = npe + params['ans_embed'][next_ans]
    batch_idx = jnp.arange(B)

    def lin(x, w, b):
        return jnp.dot(x, w, preferred_element_type=jnp.float32) + b

    def step(carry, t):
        pro_state, skill_state, all_state, last_pro_time, last_skill_time = carry
        now_pro_embed = npe[:, t]
        now_pro = next_problem[:, t]
        now_skill = next_skill[:, t]
        lpt = last_pro_time[batch_idx, now_pro]
        lps = pro_state[batch_idx, lpt]
        tg_embed = params['time_embed'][t - lpt]
        lst = last_skill_time[batch_idx, now_skill]
        lss = skill_state[batch_idx, lst]
        stg_embed = params['time_embed'][t - lst]
        atg_embed = jnp.broadcast_to(params['time_embed'][1], (B, d))
        pf = jax.nn.sigmoid(lin(jnp.concatenate([lps, tg_embed], -1),
                                params['wpf'], params['bpf']))
        lps = lps * pf
        sf = jax.nn.sigmoid(lin(jnp.concatenate([lss, stg_embed], -1),
                                params['wsf'], params['bsf']))
        lss = lss * sf
        af = jax.nn.sigmoid(lin(jnp.concatenate([all_state, atg_embed], -1),
                                params['waf'], params['baf']))
        las = all_state * af
        final_state = jnp.concatenate([las, lps, lss, now_pro_embed], -1)
        h = jax.nn.relu(lin(final_state, params['w1'], params['b1']))
        P = jax.nn.sigmoid(lin(h, params['w2'], params['b2']))[:, 0]
        nx = next_x[:, t]
        all_state = las + jnp.tanh(lin(jnp.concatenate([las, nx], -1),
                                       params['was'], params['bas']))
        ips = lps + jnp.tanh(lin(jnp.concatenate([lps, nx], -1),
                                 params['wps'], params['bps']))
        iss = lss + jnp.tanh(lin(jnp.concatenate([lss, nx], -1),
                                 params['wss'], params['bss']))
        last_pro_time = last_pro_time.at[batch_idx, now_pro].set(t)
        pro_state = pro_state.at[:, t].set(ips)
        last_skill_time = last_skill_time.at[batch_idx, now_skill].set(t)
        skill_state = skill_state.at[:, t].set(iss)
        return (pro_state, skill_state, all_state, last_pro_time, last_skill_time), P

    carry0 = (jnp.broadcast_to(params['pro_state'], (B, 199, d)),
              jnp.broadcast_to(params['skill_state'], (B, 199, d)),
              jnp.broadcast_to(params['ls_state'], (B, d)),
              jnp.zeros((B, params['pro_embed'].shape[0]), jnp.int32),
              jnp.zeros((B, params['skill_embed'].shape[0]), jnp.int32))
    _, res = jax.lax.scan(step, carry0, jnp.arange(S))
    res = res.T                                              # (B, S)
    return res * jax.nn.sigmoid(jnp.diagonal(params['g']))[None, :]


def init_params(key, pro_max, skill_max, d):
    ks = iter(jax.random.split(key, 32))
    u = lambda shape: jax.random.uniform(next(ks), shape, jnp.float32)  # ~ torch.rand

    def lin(in_f, out_f):
        bound = 1.0 / (in_f ** 0.5)                 # ~ nn.Linear default init
        w = jax.random.uniform(next(ks), (in_f, out_f), jnp.float32, -bound, bound)
        b = jax.random.uniform(next(ks), (1, out_f), jnp.float32, -bound, bound)
        return w, b

    p = {}
    p['pro_embed'] = u((pro_max, d))
    p['skill_embed'] = u((skill_max, d))
    p['ans_embed'] = u((2, d))
    p['time_embed'] = u((200, d))
    p['ls_state'] = u((1, d))
    p['pro_state'] = u((199, d))
    p['skill_state'] = u((199, d))
    p['g'] = u((199, 199))
    p['akt_pro_diff'] = u((pro_max, 1))
    p['akt_pro_change'] = u((skill_max, d))
    p['wpf'], p['bpf'] = lin(2 * d, d)
    p['wsf'], p['bsf'] = lin(2 * d, d)
    p['waf'], p['baf'] = lin(2 * d, d)
    p['wps'], p['bps'] = lin(2 * d, d)
    p['wss'], p['bss'] = lin(2 * d, d)
    p['was'], p['bas'] = lin(2 * d, d)
    p['w1'], p['b1'] = lin(4 * d, d)
    p['w2'], p['b2'] = lin(d, 1)
    return p


if __name__ == "__main__":
    B, d = 2, 16
    pro_max, skill_max = 20, 10
    seq = 199   # fixed by the forward: einsum against g (199x199)

    key = jax.random.PRNGKey(0)
    kp, k1, k2, k3 = jax.random.split(key, 4)
    params = init_params(kp, pro_max, skill_max, d)
    next_problem = jax.random.randint(k1, (B, seq), 0, pro_max)
    next_skill = jax.random.randint(k2, (B, seq), 0, skill_max)
    next_ans = jax.random.randint(k3, (B, seq), 0, 2)
    # last_* inputs exist in the torch signature but are unused by forward
    last_problem = jnp.zeros((B, seq), jnp.int32)
    last_skill = jnp.zeros((B, seq), jnp.int32)
    last_ans = jnp.zeros((B, seq), jnp.int32)

    out = jax.block_until_ready(
        rekt_forward(params, last_problem, last_skill, last_ans,
                     next_problem, next_skill, next_ans))
    ref = jax.block_until_ready(
        rekt_reference(params, next_problem, next_skill, next_ans))

    assert out.shape == (B, seq)
    err = float(jnp.max(jnp.abs(out - ref)))
    assert err < 5e-2, f"max abs diff too large: {err}"
    print("KERNEL_OK")
</pallas_src>

<mosaic_0001>
module attributes {stable_mosaic.version = 11 : i64} {
  func.func @_rekt_kernel(%arg0: i32, %arg1: memref<398xi32, #tpu.memory_space<smem>>, %arg2: memref<398xi32, #tpu.memory_space<smem>>, %arg3: memref<199x2x16xf32, #tpu.memory_space<vmem>>, %arg4: memref<199x2x16xf32, #tpu.memory_space<vmem>>, %arg5: memref<200x16xf32, #tpu.memory_space<vmem>>, %arg6: memref<1x16xf32, #tpu.memory_space<vmem>>, %arg7: memref<200x16xf32, #tpu.memory_space<vmem>>, %arg8: memref<200x16xf32, #tpu.memory_space<vmem>>, %arg9: memref<80x48xf32, #tpu.memory_space<vmem>>, %arg10: memref<1x48xf32, #tpu.memory_space<vmem>>, %arg11: memref<64x16xf32, #tpu.memory_space<vmem>>, %arg12: memref<1x16xf32, #tpu.memory_space<vmem>>, %arg13: memref<16x1xf32, #tpu.memory_space<vmem>>, %arg14: memref<1x1xf32, #tpu.memory_space<vmem>>, %arg15: memref<48x48xf32, #tpu.memory_space<vmem>>, %arg16: memref<16x48xf32, #tpu.memory_space<vmem>>, %arg17: memref<1x48xf32, #tpu.memory_space<vmem>>, %arg18: memref<2x199xf32, #tpu.memory_space<vmem>>, %arg19: memref<400x16xf32, #tpu.memory_space<vmem>>, %arg20: memref<400x16xf32, #tpu.memory_space<vmem>>, %arg21: memref<40xi32, #tpu.memory_space<smem>>, %arg22: memref<20xi32, #tpu.memory_space<smem>>) attributes {dimension_semantics = [#tpu.dimension_semantics<arbitrary>], iteration_bounds = array<i64: 1>, scalar_prefetch = 2 : i64, scratch_operands = 4 : i64, tpu.core_type = #tpu.core_type<tc>, window_params = [{pipeline_mode = #tpu.pipeline_mode<synchronous>, transform_indices = @transform_0, window_bounds = array<i64: 199, 2, 16>}, {pipeline_mode = #tpu.pipeline_mode<synchronous>, transform_indices = @transform_1, window_bounds = array<i64: 199, 2, 16>}, {pipeline_mode = #tpu.pipeline_mode<synchronous>, transform_indices = @transform_2, window_bounds = array<i64: 200, 16>}, {pipeline_mode = #tpu.pipeline_mode<synchronous>, transform_indices = @transform_3, window_bounds = array<i64: 1, 16>}, {pipeline_mode = #tpu.pipeline_mode<synchronous>, transform_indices = @transform_4, window_bounds = array<i64: 200, 16>}, {pipeline_mode = #tpu.pipeline_mode<synchronous>, transform_indices = @transform_5, window_bounds = array<i64: 200, 16>}, {pipeline_mode = #tpu.pipeline_mode<synchronous>, transform_indices = @transform_6, window_bounds = array<i64: 80, 48>}, {pipeline_mode = #tpu.pipeline_mode<synchronous>, transform_indices = @transform_7, window_bounds = array<i64: 1, 48>}, {pipeline_mode = #tpu.pipeline_mode<synchronous>, transform_indices = @transform_8, window_bounds = array<i64: 64, 16>}, {pipeline_mode = #tpu.pipeline_mode<synchronous>, transform_indices = @transform_9, window_bounds = array<i64: 1, 16>}, {pipeline_mode = #tpu.pipeline_mode<synchronous>, transform_indices = @transform_10, window_bounds = array<i64: 16, 1>}, {pipeline_mode = #tpu.pipeline_mode<synchronous>, transform_indices = @transform_11, window_bounds = array<i64: 1, 1>}, {pipeline_mode = #tpu.pipeline_mode<synchronous>, transform_indices = @transform_12, window_bounds = array<i64: 48, 48>}, {pipeline_mode = #tpu.pipeline_mode<synchronous>, transform_indices = @transform_13, window_bounds = array<i64: 16, 48>}, {pipeline_mode = #tpu.pipeline_mode<synchronous>, transform_indices = @transform_14, window_bounds = array<i64: 1, 48>}, {pipeline_mode = #tpu.pipeline_mode<synchronous>, transform_indices = @transform_15, window_bounds = array<i64: 2, 199>}]} {
    %c0 = arith.constant 0 : index
    %c0_0 = arith.constant 0 : index
    %0 = vector.load %arg7[%c0, %c0_0] : memref<200x16xf32, #tpu.memory_space<vmem>>, vector<200x16xf32>
    %c0_1 = arith.constant 0 : index
    %c0_2 = arith.constant 0 : index
    %1 = vector.load %arg19[%c0_1, %c0_2] : memref<400x16xf32, #tpu.memory_space<vmem>>, vector<200x16xf32>
    tpu.vector_store %arg19[%c0_1, %c0_2], %0 {strides = array<i32>} : memref<400x16xf32, #tpu.memory_space<vmem>>, vector<200x16xf32>,
    %c0_3 = arith.constant 0 : index
    %c0_4 = arith.constant 0 : index
    %2 = vector.load %arg8[%c0_3, %c0_4] : memref<200x16xf32, #tpu.memory_space<vmem>>, vector<200x16xf32>
    %c0_5 = arith.constant 0 : index
    %c0_6 = arith.constant 0 : index
    %3 = vector.load %arg20[%c0_5, %c0_6] : memref<400x16xf32, #tpu.memory_space<vmem>>, vector<200x16xf32>
    tpu.vector_store %arg20[%c0_5, %c0_6], %2 {strides = array<i32>} : memref<400x16xf32, #tpu.memory_space<vmem>>, vector<200x16xf32>,
    %c0_7 = arith.constant 0 : index
    %c0_8 = arith.constant 0 : index
    %4 = vector.load %arg7[%c0_7, %c0_8] : memref<200x16xf32, #tpu.memory_space<vmem>>, vector<200x16xf32>
    %c200 = arith.constant 200 : index
    %c0_9 = arith.constant 0 : index
    %5 = vector.load %arg19[%c200, %c0_9] : memref<400x16xf32, #tpu.memory_space<vmem>>, vector<200x16xf32>
    tpu.vector_store %arg19[%c200, %c0_9], %4 {strides = array<i32>} : memref<400x16xf32, #tpu.memory_space<vmem>>, vector<200x16xf32>,
    %c0_10 = arith.constant 0 : index
    %c0_11 = arith.constant 0 : index
    %6 = vector.load %arg8[%c0_10, %c0_11] : memref<200x16xf32, #tpu.memory_space<vmem>>, vector<200x16xf32>
    %c200_12 = arith.constant 200 : index
    %c0_13 = arith.constant 0 : index
    %7 = vector.load %arg20[%c200_12, %c0_13] : memref<400x16xf32, #tpu.memory_space<vmem>>, vector<200x16xf32>
    tpu.vector_store %arg20[%c200_12, %c0_13], %6 {strides = array<i32>} : memref<400x16xf32, #tpu.memory_space<vmem>>, vector<200x16xf32>,
    %c0_i32 = arith.constant 0 : i32
    %c40_i32 = arith.constant 40 : i32
    %8 = arith.addi %c0_i32, %c40_i32 : i32
    %c1_i32 = arith.constant 1 : i32
    scf.for %arg23 = %c0_i32 to %8 step %c1_i32  : i32 {
      %c0_i32_92 = arith.constant 0 : i32
      %146 = arith.index_cast %arg23 : i32 to index
      %147 = memref.load %arg21[%146] : memref<40xi32, #tpu.memory_space<smem>>
      memref.store %c0_i32_92, %arg21[%146] : memref<40xi32, #tpu.memory_space<smem>>
    }
    %c40_i32_14 = arith.constant 40 : i32
    %c0_i32_15 = arith.constant 0 : i32
    %c20_i32 = arith.constant 20 : i32
    %9 = arith.addi %c0_i32_15, %c20_i32 : i32
    %c1_i32_16 = arith.constant 1 : i32
    scf.for %arg23 = %c0_i32_15 to %9 step %c1_i32_16  : i32 {
      %c0_i32_92 = arith.constant 0 : i32
      %146 = arith.index_cast %arg23 : i32 to index
      %147 = memref.load %arg22[%146] : memref<20xi32, #tpu.memory_space<smem>>
      memref.store %c0_i32_92, %arg22[%146] : memref<20xi32, #tpu.memory_space<smem>>
    }
    %c20_i32_17 = arith.constant 20 : i32
    %10 = tpu.iota {dimensions = array<i32: 1>} : vector<1x199xi32>
    %c0_18 = arith.constant 0 : index
    %c0_19 = arith.constant 0 : index
    %11 = vector.load %arg10[%c0_18, %c0_19] : memref<1x48xf32, #tpu.memory_space<vmem>>, vector<1x48xf32>
    %12 = vector.shape_cast %11 : vector<1x48xf32> to vector<1x48xf32>
    %13 = vector.broadcast %12 : vector<1x48xf32> to vector<2x48xf32>
    %c0_20 = arith.constant 0 : index
    %c0_21 = arith.constant 0 : index
    %14 = vector.load %arg12[%c0_20, %c0_21] : memref<1x16xf32, #tpu.memory_space<vmem>>, vector<1x16xf32>
    %15 = vector.shape_cast %14 : vector<1x16xf32> to vector<1x16xf32>
    %16 = vector.broadcast %15 : vector<1x16xf32> to vector<2x16xf32>
    %c0_22 = arith.constant 0 : index
    %c0_23 = arith.constant 0 : index
    %17 = vector.load %arg14[%c0_22, %c0_23] : memref<1x1xf32, #tpu.memory_space<vmem>>, vector<1x1xf32>
    %18 = vector.shape_cast %17 : vector<1x1xf32> to vector<1x1xf32>
    %19 = vector.broadcast %18 : vector<1x1xf32> to vector<2x1xf32>
    %c0_24 = arith.constant 0 : index
    %c0_25 = arith.constant 0 : index
    %20 = vector.load %arg17[%c0_24, %c0_25] : memref<1x48xf32, #tpu.memory_space<vmem>>, vector<1x48xf32>
    %21 = vector.shape_cast %20 : vector<1x48xf32> to vector<1x48xf32>
    %22 = vector.broadcast %21 : vector<1x48xf32> to vector<2x48xf32>
    %c0_26 = arith.constant 0 : index
    %c0_27 = arith.constant 0 : index
    %23 = vector.load %arg6[%c0_26, %c0_27] : memref<1x16xf32, #tpu.memory_space<vmem>>, vector<1x16xf32>
    %24 = vector.shape_cast %23 : vector<1x16xf32> to vector<1x16xf32>
    %25 = vector.broadcast %24 : vector<1x16xf32> to vector<2x16xf32>
    %cst = arith.constant 0.000000e+00 : f32
    %26 = vector.broadcast %cst : f32 to vector<2x199xf32>
    %c0_i32_28 = arith.constant 0 : i32
    %c99_i32 = arith.constant 99 : i32
    %27 = arith.addi %c0_i32_28, %c99_i32 : i32
    %c1_i32_29 = arith.constant 1 : i32
    %28:2 = scf.for %arg23 = %c0_i32_28 to %27 step %c1_i32_29 iter_args(%arg24 = %25, %arg25 = %26) -> (vector<2x16xf32>, vector<2x199xf32>)  : i32 {
      %c2_i32 = arith.constant 2 : i32
      %146 = arith.muli %arg23, %c2_i32 : i32
      %c0_i32_92 = arith.constant 0 : i32
      %147 = arith.addi %146, %c0_i32_92 : i32
      %c0_i32_93 = arith.constant 0 : i32
      %148 = arith.addi %c0_i32_93, %147 : i32
      %149 = arith.index_cast %148 : i32 to index
      %150 = memref.load %arg1[%149] : memref<398xi32, #tpu.memory_space<smem>>
      %c199_i32 = arith.constant 199 : i32
      %151 = arith.addi %c199_i32, %147 : i32
      %152 = arith.index_cast %151 : i32 to index
      %153 = memref.load %arg1[%152] : memref<398xi32, #tpu.memory_space<smem>>
      %c0_i32_94 = arith.constant 0 : i32
      %154 = arith.addi %c0_i32_94, %147 : i32
      %155 = arith.index_cast %154 : i32 to index
      %156 = memref.load %arg2[%155] : memref<398xi32, #tpu.memory_space<smem>>
      %c199_i32_95 = arith.constant 199 : i32
      %157 = arith.addi %c199_i32_95, %147 : i32
      %158 = arith.index_cast %157 : i32 to index
      %159 = memref.load %arg2[%158] : memref<398xi32, #tpu.memory_space<smem>>
      %c0_i32_96 = arith.constant 0 : i32
      %160 = arith.addi %c0_i32_96, %150 : i32
      %161 = arith.index_cast %160 : i32 to index
      %162 = memref.load %arg21[%161] : memref<40xi32, #tpu.memory_space<smem>>
      %c20_i32_97 = arith.constant 20 : i32
      %163 = arith.addi %c20_i32_97, %153 : i32
      %164 = arith.index_cast %163 : i32 to index
      %165 = memref.load %arg21[%164] : memref<40xi32, #tpu.memory_space<smem>>
      %c0_i32_98 = arith.constant 0 : i32
      %166 = arith.addi %c0_i32_98, %156 : i32
      %167 = arith.index_cast %166 : i32 to index
      %168 = memref.load %arg22[%167] : memref<20xi32, #tpu.memory_space<smem>>
      %c10_i32_99 = arith.constant 10 : i32
      %169 = arith.addi %c10_i32_99, %159 : i32
      %170 = arith.index_cast %169 : i32 to index
      %171 = memref.load %arg22[%170] : memref<20xi32, #tpu.memory_space<smem>>
      %c0_i32_100 = arith.constant 0 : i32
      %172 = arith.addi %c0_i32_100, %162 : i32
      %173 = arith.index_cast %172 : i32 to index
      %c0_101 = arith.constant 0 : index
      %174 = vector.load %arg19[%173, %c0_101] : memref<400x16xf32, #tpu.memory_space<vmem>>, vector<1x16xf32>
      %c200_i32_102 = arith.constant 200 : i32
      %175 = arith.addi %c200_i32_102, %165 : i32
      %176 = arith.index_cast %175 : i32 to index
      %c0_103 = arith.constant 0 : index
      %177 = vector.load %arg19[%176, %c0_103] : memref<400x16xf32, #tpu.memory_space<vmem>>, vector<1x16xf32>
      %178 = tpu.concatenate %174, %177 in 0 : vector<1x16xf32>, vector<1x16xf32> -> vector<2x16xf32>
      %179 = arith.subi %147, %162 : i32
      %180 = arith.index_cast %179 : i32 to index
      %c0_104 = arith.constant 0 : index
      %181 = vector.load %arg5[%180, %c0_104] : memref<200x16xf32, #tpu.memory_space<vmem>>, vector<1x16xf32>
      %182 = arith.subi %147, %165 : i32
      %183 = arith.index_cast %182 : i32 to index
      %c0_105 = arith.constant 0 : index
      %184 = vector.load %arg5[%183, %c0_105] : memref<200x16xf32, #tpu.memory_space<vmem>>, vector<1x16xf32>
      %185 = tpu.concatenate %181, %184 in 0 : vector<1x16xf32>, vector<1x16xf32> -> vector<2x16xf32>
      %c0_i32_106 = arith.constant 0 : i32
      %186 = arith.addi %c0_i32_106, %168 : i32
      %187 = arith.index_cast %186 : i32 to index
      %c0_107 = arith.constant 0 : index
      %188 = vector.load %arg20[%187, %c0_107] : memref<400x16xf32, #tpu.memory_space<vmem>>, vector<1x16xf32>
      %c200_i32_108 = arith.constant 200 : i32
      %189 = arith.addi %c200_i32_108, %171 : i32
      %190 = arith.index_cast %189 : i32 to index
      %c0_109 = arith.constant 0 : index
      %191 = vector.load %arg20[%190, %c0_109] : memref<400x16xf32, #tpu.memory_space<vmem>>, vector<1x16xf32>
      %192 = tpu.concatenate %188, %191 in 0 : vector<1x16xf32>, vector<1x16xf32> -> vector<2x16xf32>
      %193 = arith.subi %147, %168 : i32
      %194 = arith.index_cast %193 : i32 to index
      %c0_110 = arith.constant 0 : index
      %195 = vector.load %arg5[%194, %c0_110] : memref<200x16xf32, #tpu.memory_space<vmem>>, vector<1x16xf32>
      %196 = arith.subi %147, %171 : i32
      %197 = arith.index_cast %196 : i32 to index
      %c0_111 = arith.constant 0 : index
      %198 = vector.load %arg5[%197, %c0_111] : memref<200x16xf32, #tpu.memory_space<vmem>>, vector<1x16xf32>
      %199 = tpu.concatenate %195, %198 in 0 : vector<1x16xf32>, vector<1x16xf32> -> vector<2x16xf32>
      %200 = arith.index_cast %147 : i32 to index
      %c0_112 = arith.constant 0 : index
      %c0_113 = arith.constant 0 : index
      %201 = vector.load %arg3[%200, %c0_112, %c0_113] : memref<199x2x16xf32, #tpu.memory_space<vmem>>, vector<1x2x16xf32>
      %202 = vector.shape_cast %201 : vector<1x2x16xf32> to vector<2x16xf32>
      %203 = arith.index_cast %147 : i32 to index
      %c0_114 = arith.constant 0 : index
      %c0_115 = arith.constant 0 : index
      %204 = vector.load %arg4[%203, %c0_114, %c0_115] : memref<199x2x16xf32, #tpu.memory_space<vmem>>, vector<1x2x16xf32>
      %205 = vector.shape_cast %204 : vector<1x2x16xf32> to vector<2x16xf32>
      %206 = tpu.concatenate %178, %185, %192, %199, %arg24 in 1 : vector<2x16xf32>, vector<2x16xf32>, vector<2x16xf32>, vector<2x16xf32>, vector<2x16xf32> -> vector<2x80xf32>
      %c0_116 = arith.constant 0 : index
      %c0_117 = arith.constant 0 : index
      %207 = vector.load %arg9[%c0_116, %c0_117] : memref<80x48xf32, #tpu.memory_space<vmem>>, vector<80x48xf32>
      %cst_118 = arith.constant dense<0.000000e+00> : vector<2x48xf32>
      %208 = tpu.matmul %206, %207, %cst_118 {dimension_numbers = #tpu.dot_dimension_numbers<[1], [0], [0], [1], [0, 0, 1, 1], [], []>} : vector<2x80xf32>, vector<80x48xf32>, vector<2x48xf32> -> vector<2x48xf32>
      %209 = arith.addf %208, %13 : vector<2x48xf32>
      %210 = arith.negf %209 : vector<2x48xf32>
      %211 = math.exp %210 : vector<2x48xf32>
      %cst_119 = arith.constant 1.000000e+00 : f32
      %212 = vector.broadcast %cst_119 : f32 to vector<2x48xf32>
      %213 = arith.addf %212, %211 : vector<2x48xf32>
      %214 = arith.divf %212, %213 : vector<2x48xf32>
      %215 = vector.extract_strided_slice %214 {offsets = [0, 0], sizes = [2, 16], strides = [1, 1]} : vector<2x48xf32> to vector<2x16xf32>
      %216 = arith.mulf %178, %215 : vector<2x16xf32>
      %217 = vector.extract_strided_slice %214 {offsets = [0, 16], sizes = [2, 16], strides = [1, 1]} : vector<2x48xf32> to vector<2x16xf32>
      %218 = arith.mulf %192, %217 : vector<2x16xf32>
      %219 = vector.extract_strided_slice %214 {offsets = [0, 32], sizes = [2, 16], strides = [1, 1]} : vector<2x48xf32> to vector<2x16xf32>
      %220 = arith.mulf %arg24, %219 : vector<2x16xf32>
      %221 = tpu.concatenate %220, %216, %218 in 1 : vector<2x16xf32>, vector<2x16xf32>, vector<2x16xf32> -> vector<2x48xf32>
      %222 = tpu.concatenate %221, %202 in 1 : vector<2x48xf32>, vector<2x16xf32> -> vector<2x64xf32>
      %c0_120 = arith.constant 0 : index
      %c0_121 = arith.constant 0 : index
      %223 = vector.load %arg11[%c0_120, %c0_121] : memref<64x16xf32, #tpu.memory_space<vmem>>, vector<64x16xf32>
      %cst_122 = arith.constant dense<0.000000e+00> : vector<2x16xf32>
      %224 = tpu.matmul %222, %223, %cst_122 {dimension_numbers = #tpu.dot_dimension_numbers<[1], [0], [0], [1], [0, 0, 1, 1], [], []>} : vector<2x64xf32>, vector<64x16xf32>, vector<2x16xf32> -> vector<2x16xf32>
      %225 = arith.addf %224, %16 : vector<2x16xf32>
      %cst_123 = arith.constant 0.000000e+00 : f32
      %226 = vector.broadcast %cst_123 : f32 to vector<2x16xf32>
      %227 = arith.maximumf %225, %226 : vector<2x16xf32>
      %c0_124 = arith.constant 0 : index
      %c0_125 = arith.constant 0 : index
      %228 = vector.load %arg13[%c0_124, %c0_125] : memref<16x1xf32, #tpu.memory_space<vmem>>, vector<16x1xf32>
      %cst_126 = arith.constant dense<0.000000e+00> : vector<2x1xf32>
      %229 = tpu.matmul %227, %228, %cst_126 {dimension_numbers = #tpu.dot_dimension_numbers<[1], [0], [0], [1], [0, 0, 1, 1], [], []>} : vector<2x16xf32>, vector<16x1xf32>, vector<2x1xf32> -> vector<2x1xf32>
      %230 = arith.addf %229, %19 : vector<2x1xf32>
      %231 = arith.negf %230 : vector<2x1xf32>
      %232 = math.exp %231 : vector<2x1xf32>
      %cst_127 = arith.constant 1.000000e+00 : f32
      %233 = vector.broadcast %cst_127 : f32 to vector<2x1xf32>
      %234 = arith.addf %233, %232 : vector<2x1xf32>
      %235 = arith.divf %233, %234 : vector<2x1xf32>
      %236 = vector.broadcast %147 : i32 to vector<1x199xi32>
      %237 = arith.cmpi eq, %10, %236 : vector<1x199xi32>
      %238 = vector.shape_cast %237 : vector<1x199xi1> to vector<1x199xi1>
      %239 = vector.broadcast %238 : vector<1x199xi1> to vector<2x199xi1>
      %240 = vector.shape_cast %235 : vector<2x1xf32> to vector<2x1xf32>
      %241 = vector.broadcast %240 : vector<2x1xf32> to vector<2x199xf32>
      %242 = arith.select %239, %241, %arg25 : vector<2x199xi1>, vector<2x199xf32>
      %c0_128 = arith.constant 0 : index
      %c0_129 = arith.constant 0 : index
      %243 = vector.load %arg15[%c0_128, %c0_129] : memref<48x48xf32, #tpu.memory_space<vmem>>, vector<48x48xf32>
      %cst_130 = arith.constant dense<0.000000e+00> : vector<2x48xf32>
      %244 = tpu.matmul %221, %243, %cst_130 {dimension_numbers = #tpu.dot_dimension_numbers<[1], [0], [0], [1], [0, 0, 1, 1], [], []>} : vector<2x48xf32>, vector<48x48xf32>, vector<2x48xf32> -> vector<2x48xf32>
      %c0_131 = arith.constant 0 : index
      %c0_132 = arith.constant 0 : index
      %245 = vector.load %arg16[%c0_131, %c0_132] : memref<16x48xf32, #tpu.memory_space<vmem>>, vector<16x48xf32>
      %cst_133 = arith.constant dense<0.000000e+00> : vector<2x48xf32>
      %246 = tpu.matmul %205, %245, %cst_133 {dimension_numbers = #tpu.dot_dimension_numbers<[1], [0], [0], [1], [0, 0, 1, 1], [], []>} : vector<2x16xf32>, vector<16x48xf32>, vector<2x48xf32> -> vector<2x48xf32>
      %247 = arith.addf %244, %246 : vector<2x48xf32>
      %248 = arith.addf %247, %22 : vector<2x48xf32>
      %249 = math.tanh %248 : vector<2x48xf32>
      %250 = vector.extract_strided_slice %249 {offsets = [0, 0], sizes = [2, 16], strides = [1, 1]} : vector<2x48xf32> to vector<2x16xf32>
      %251 = arith.addf %220, %250 : vector<2x16xf32>
      %252 = vector.extract_strided_slice %249 {offsets = [0, 16], sizes = [2, 16], strides = [1, 1]} : vector<2x48xf32> to vector<2x16xf32>
      %253 = arith.addf %216, %252 : vector<2x16xf32>
      %254 = vector.extract_strided_slice %249 {offsets = [0, 32], sizes = [2, 16], strides = [1, 1]} : vector<2x48xf32> to vector<2x16xf32>
      %255 = arith.addf %218, %254 : vector<2x16xf32>
      %256 = vector.extract_strided_slice %253 {offsets = [0, 0], sizes = [1, 16], strides = [1, 1]} : vector<2x16xf32> to vector<1x16xf32>
      %c0_i32_134 = arith.constant 0 : i32
      %257 = arith.addi %c0_i32_134, %147 : i32
      %258 = arith.index_cast %257 : i32 to index
      %c0_135 = arith.constant 0 : index
      %259 = vector.load %arg19[%258, %c0_135] : memref<400x16xf32, #tpu.memory_space<vmem>>, vector<1x16xf32>
      tpu.vector_store %arg19[%258, %c0_135], %256 {strides = array<i32>} : memref<400x16xf32, #tpu.memory_space<vmem>>, vector<1x16xf32>,
      %260 = vector.extract_strided_slice %255 {offsets = [0, 0], sizes = [1, 16], strides = [1, 1]} : vector<2x16xf32> to vector<1x16xf32>
      %c0_i32_136 = arith.constant 0 : i32
      %261 = arith.addi %c0_i32_136, %147 : i32
      %262 = arith.index_cast %261 : i32 to index
      %c0_137 = arith.constant 0 : index
      %263 = vector.load %arg20[%262, %c0_137] : memref<400x16xf32, #tpu.memory_space<vmem>>, vector<1x16xf32>
      tpu.vector_store %arg20[%262, %c0_137], %260 {strides = array<i32>} : memref<400x16xf32, #tpu.memory_space<vmem>>, vector<1x16xf32>,
      %c0_i32_138 = arith.constant 0 : i32
      %264 = arith.addi %c0_i32_138, %150 : i32
      %265 = arith.index_cast %264 : i32 to index
      %266 = memref.load %arg21[%265] : memref<40xi32, #tpu.memory_space<smem>>
      memref.store %147, %arg21[%265] : memref<40xi32, #tpu.memory_space<smem>>
      %c0_i32_139 = arith.constant 0 : i32
      %267 = arith.addi %c0_i32_139, %156 : i32
      %268 = arith.index_cast %267 : i32 to index
      %269 = memref.load %arg22[%268] : memref<20xi32, #tpu.memory_space<smem>>
      memref.store %147, %arg22[%268] : memref<20xi32, #tpu.memory_space<smem>>
      %270 = vector.extract_strided_slice %253 {offsets = [1, 0], sizes = [1, 16], strides = [1, 1]} : vector<2x16xf32> to vector<1x16xf32>
      %c200_i32_140 = arith.constant 200 : i32
      %271 = arith.addi %c200_i32_140, %147 : i32
      %272 = arith.index_cast %271 : i32 to index
      %c0_141 = arith.constant 0 : index
      %273 = vector.load %arg19[%272, %c0_141] : memref<400x16xf32, #tpu.memory_space<vmem>>, vector<1x16xf32>
      tpu.vector_store %arg19[%272, %c0_141], %270 {strides = array<i32>} : memref<400x16xf32, #tpu.memory_space<vmem>>, vector<1x16xf32>,
      %274 = vector.extract_strided_slice %255 {offsets = [1, 0], sizes = [1, 16], strides = [1, 1]} : vector<2x16xf32> to vector<1x16xf32>
      %c200_i32_142 = arith.constant 200 : i32
      %275 = arith.addi %c200_i32_142, %147 : i32
      %276 = arith.index_cast %275 : i32 to index
      %c0_143 = arith.constant 0 : index
      %277 = vector.load %arg20[%276, %c0_143] : memref<400x16xf32, #tpu.memory_space<vmem>>, vector<1x16xf32>
      tpu.vector_store %arg20[%276, %c0_143], %274 {strides = array<i32>} : memref<400x16xf32, #tpu.memory_space<vmem>>, vector<1x16xf32>,
      %c20_i32_144 = arith.constant 20 : i32
      %278 = arith.addi %c20_i32_144, %153 : i32
      %279 = arith.index_cast %278 : i32 to index
      %280 = memref.load %arg21[%279] : memref<40xi32, #tpu.memory_space<smem>>
      memref.store %147, %arg21[%279] : memref<40xi32, #tpu.memory_space<smem>>
      %c10_i32_145 = arith.constant 10 : i32
      %281 = arith.addi %c10_i32_145, %159 : i32
      %282 = arith.index_cast %281 : i32 to index
      %283 = memref.load %arg22[%282] : memref<20xi32, #tpu.memory_space<smem>>
      memref.store %147, %arg22[%282] : memref<20xi32, #tpu.memory_space<smem>>
      %c1_i32_146 = arith.constant 1 : i32
      %284 = arith.addi %146, %c1_i32_146 : i32
      %c0_i32_147 = arith.constant 0 : i32
      %285 = arith.addi %c0_i32_147, %284 : i32
      %286 = arith.index_cast %285 : i32 to index
      %287 = memref.load %arg1[%286] : memref<398xi32, #tpu.memory_space<smem>>
      %c199_i32_148 = arith.constant 199 : i32
      %288 = arith.addi %c199_i32_148, %284 : i32
      %289 = arith.index_cast %288 : i32 to index
      %290 = memref.load %arg1[%289] : memref<398xi32, #tpu.memory_space<smem>>
      %c0_i32_149 = arith.constant 0 : i32
      %291 = arith.addi %c0_i32_149, %284 : i32
      %292 = arith.index_cast %291 : i32 to index
      %293 = memref.load %arg2[%292] : memref<398xi32, #tpu.memory_space<smem>>
      %c199_i32_150 = arith.constant 199 : i32
      %294 = arith.addi %c199_i32_150, %284 : i32
      %295 = arith.index_cast %294 : i32 to index
      %296 = memref.load %arg2[%295] : memref<398xi32, #tpu.memory_space<smem>>
      %c0_i32_151 = arith.constant 0 : i32
      %297 = arith.addi %c0_i32_151, %287 : i32
      %298 = arith.index_cast %297 : i32 to index
      %299 = memref.load %arg21[%298] : memref<40xi32, #tpu.memory_space<smem>>
      %c20_i32_152 = arith.constant 20 : i32
      %300 = arith.addi %c20_i32_152, %290 : i32
      %301 = arith.index_cast %300 : i32 to index
      %302 = memref.load %arg21[%301] : memref<40xi32, #tpu.memory_space<smem>>
      %c0_i32_153 = arith.constant 0 : i32
      %303 = arith.addi %c0_i32_153, %293 : i32
      %304 = arith.index_cast %303 : i32 to index
      %305 = memref.load %arg22[%304] : memref<20xi32, #tpu.memory_space<smem>>
      %c10_i32_154 = arith.constant 10 : i32
      %306 = arith.addi %c10_i32_154, %296 : i32
      %307 = arith.index_cast %306 : i32 to index
      %308 = memref.load %arg22[%307] : memref<20xi32, #tpu.memory_space<smem>>
      %c0_i32_155 = arith.constant 0 : i32
      %309 = arith.addi %c0_i32_155, %299 : i32
      %310 = arith.index_cast %309 : i32 to index
      %c0_156 = arith.constant 0 : index
      %311 = vector.load %arg19[%310, %c0_156] : memref<400x16xf32, #tpu.memory_space<vmem>>, vector<1x16xf32>
      %c200_i32_157 = arith.constant 200 : i32
      %312 = arith.addi %c200_i32_157, %302 : i32
      %313 = arith.index_cast %312 : i32 to index
      %c0_158 = arith.constant 0 : index
      %314 = vector.load %arg19[%313, %c0_158] : memref<400x16xf32, #tpu.memory_space<vmem>>, vector<1x16xf32>
      %315 = tpu.concatenate %311, %314 in 0 : vector<1x16xf32>, vector<1x16xf32> -> vector<2x16xf32>
      %316 = arith.subi %284, %299 : i32
      %317 = arith.index_cast %316 : i32 to index
      %c0_159 = arith.constant 0 : index
      %318 = vector.load %arg5[%317, %c0_159] : memref<200x16xf32, #tpu.memory_space<vmem>>, vector<1x16xf32>
      %319 = arith.subi %284, %302 : i32
      %320 = arith.index_cast %319 : i32 to index
      %c0_160 = arith.constant 0 : index
      %321 = vector.load %arg5[%320, %c0_160] : memref<200x16xf32, #tpu.memory_space<vmem>>, vector<1x16xf32>
      %322 = tpu.concatenate %318, %321 in 0 : vector<1x16xf32>, vector<1x16xf32> -> vector<2x16xf32>
      %c0_i32_161 = arith.constant 0 : i32
      %323 = arith.addi %c0_i32_161, %305 : i32
      %324 = arith.index_cast %323 : i32 to index
      %c0_162 = arith.constant 0 : index
      %325 = vector.load %arg20[%324, %c0_162] : memref<400x16xf32, #tpu.memory_space<vmem>>, vector<1x16xf32>
      %c200_i32_163 = arith.constant 200 : i32
      %326 = arith.addi %c200_i32_163, %308 : i32
      %327 = arith.index_cast %326 : i32 to index
      %c0_164 = arith.constant 0 : index
      %328 = vector.load %arg20[%327, %c0_164] : memref<400x16xf32, #tpu.memory_space<vmem>>, vector<1x16xf32>
      %329 = tpu.concatenate %325, %328 in 0 : vector<1x16xf32>, vector<1x16xf32> -> vector<2x16xf32>
      %330 = arith.subi %284, %305 : i32
      %331 = arith.index_cast %330 : i32 to index
      %c0_165 = arith.constant 0 : index
      %332 = vector.load %arg5[%331, %c0_165] : memref<200x16xf32, #tpu.memory_space<vmem>>, vector<1x16xf32>
      %333 = arith.subi %284, %308 : i32
      %334 = arith.index_cast %333 : i32 to index
      %c0_166 = arith.constant 0 : index
      %335 = vector.load %arg5[%334, %c0_166] : memref<200x16xf32, #tpu.memory_space<vmem>>, vector<1x16xf32>
      %336 = tpu.concatenate %332, %335 in 0 : vector<1x16xf32>, vector<1x16xf32> -> vector<2x16xf32>
      %337 = arith.index_cast %284 : i32 to index
      %c0_167 = arith.constant 0 : index
      %c0_168 = arith.constant 0 : index
      %338 = vector.load %arg3[%337, %c0_167, %c0_168] : memref<199x2x16xf32, #tpu.memory_space<vmem>>, vector<1x2x16xf32>
      %339 = vector.shape_cast %338 : vector<1x2x16xf32> to vector<2x16xf32>
      %340 = arith.index_cast %284 : i32 to index
      %c0_169 = arith.constant 0 : index
      %c0_170 = arith.constant 0 : index
      %341 = vector.load %arg4[%340, %c0_169, %c0_170] : memref<199x2x16xf32, #tpu.memory_space<vmem>>, vector<1x2x16xf32>
      %342 = vector.shape_cast %341 : vector<1x2x16xf32> to vector<2x16xf32>
      %343 = tpu.concatenate %315, %322, %329, %336, %251 in 1 : vector<2x16xf32>, vector<2x16xf32>, vector<2x16xf32>, vector<2x16xf32>, vector<2x16xf32> -> vector<2x80xf32>
      %c0_171 = arith.constant 0 : index
      %c0_172 = arith.constant 0 : index
      %344 = vector.load %arg9[%c0_171, %c0_172] : memref<80x48xf32, #tpu.memory_space<vmem>>, vector<80x48xf32>
      %cst_173 = arith.constant dense<0.000000e+00> : vector<2x48xf32>
      %345 = tpu.matmul %343, %344, %cst_173 {dimension_numbers = #tpu.dot_dimension_numbers<[1], [0], [0], [1], [0, 0, 1, 1], [], []>} : vector<2x80xf32>, vector<80x48xf32>, vector<2x48xf32> -> vector<2x48xf32>
      %346 = arith.addf %345, %13 : vector<2x48xf32>
      %347 = arith.negf %346 : vector<2x48xf32>
      %348 = math.exp %347 : vector<2x48xf32>
      %cst_174 = arith.constant 1.000000e+00 : f32
      %349 = vector.broadcast %cst_174 : f32 to vector<2x48xf32>
      %350 = arith.addf %349, %348 : vector<2x48xf32>
      %351 = arith.divf %349, %350 : vector<2x48xf32>
      %352 = vector.extract_strided_slice %351 {offsets = [0, 0], sizes = [2, 16], strides = [1, 1]} : vector<2x48xf32> to vector<2x16xf32>
      %353 = arith.mulf %315, %352 : vector<2x16xf32>
      %354 = vector.extract_strided_slice %351 {offsets = [0, 16], sizes = [2, 16], strides = [1, 1]} : vector<2x48xf32> to vector<2x16xf32>
      %355 = arith.mulf %329, %354 : vector<2x16xf32>
      %356 = vector.extract_strided_slice %351 {offsets = [0, 32], sizes = [2, 16], strides = [1, 1]} : vector<2x48xf32> to vector<2x16xf32>
      %357 = arith.mulf %251, %356 : vector<2x16xf32>
      %358 = tpu.concatenate %357, %353, %355 in 1 : vector<2x16xf32>, vector<2x16xf32>, vector<2x16xf32> -> vector<2x48xf32>
      %359 = tpu.concatenate %358, %339 in 1 : vector<2x48xf32>, vector<2x16xf32> -> vector<2x64xf32>
      %c0_175 = arith.constant 0 : index
      %c0_176 = arith.constant 0 : index
      %360 = vector.load %arg11[%c0_175, %c0_176] : memref<64x16xf32, #tpu.memory_space<vmem>>, vector<64x16xf32>
      %cst_177 = arith.constant dense<0.000000e+00> : vector<2x16xf32>
      %361 = tpu.matmul %359, %360, %cst_177 {dimension_numbers = #tpu.dot_dimension_numbers<[1], [0], [0], [1], [0, 0, 1, 1], [], []>} : vector<2x64xf32>, vector<64x16xf32>, vector<2x16xf32> -> vector<2x16xf32>
      %362 = arith.addf %361, %16 : vector<2x16xf32>
      %cst_178 = arith.constant 0.000000e+00 : f32
      %363 = vector.broadcast %cst_178 : f32 to vector<2x16xf32>
      %364 = arith.maximumf %362, %363 : vector<2x16xf32>
      %c0_179 = arith.constant 0 : index
      %c0_180 = arith.constant 0 : index
      %365 = vector.load %arg13[%c0_179, %c0_180] : memref<16x1xf32, #tpu.memory_space<vmem>>, vector<16x1xf32>
      %cst_181 = arith.constant dense<0.000000e+00> : vector<2x1xf32>
      %366 = tpu.matmul %364, %365, %cst_181 {dimension_numbers = #tpu.dot_dimension_numbers<[1], [0], [0], [1], [0, 0, 1, 1], [], []>} : vector<2x16xf32>, vector<16x1xf32>, vector<2x1xf32> -> vector<2x1xf32>
      %367 = arith.addf %366, %19 : vector<2x1xf32>
      %368 = arith.negf %367 : vector<2x1xf32>
      %369 = math.exp %368 : vector<2x1xf32>
      %cst_182 = arith.constant 1.000000e+00 : f32
      %370 = vector.broadcast %cst_182 : f32 to vector<2x1xf32>
      %371 = arith.addf %370, %369 : vector<2x1xf32>
      %372 = arith.divf %370, %371 : vector<2x1xf32>
      %373 = vector.broadcast %284 : i32 to vector<1x199xi32>
      %374 = arith.cmpi eq, %10, %373 : vector<1x199xi32>
      %375 = vector.shape_cast %374 : vector<1x199xi1> to vector<1x199xi1>
      %376 = vector.broadcast %375 : vector<1x199xi1> to vector<2x199xi1>
      %377 = vector.shape_cast %372 : vector<2x1xf32> to vector<2x1xf32>
      %378 = vector.broadcast %377 : vector<2x1xf32> to vector<2x199xf32>
      %379 = arith.select %376, %378, %242 : vector<2x199xi1>, vector<2x199xf32>
      %c0_183 = arith.constant 0 : index
      %c0_184 = arith.constant 0 : index
      %380 = vector.load %arg15[%c0_183, %c0_184] : memref<48x48xf32, #tpu.memory_space<vmem>>, vector<48x48xf32>
      %cst_185 = arith.constant dense<0.000000e+00> : vector<2x48xf32>
      %381 = tpu.matmul %358, %380, %cst_185 {dimension_numbers = #tpu.dot_dimension_numbers<[1], [0], [0], [1], [0, 0, 1, 1], [], []>} : vector<2x48xf32>, vector<48x48xf32>, vector<2x48xf32> -> vector<2x48xf32>
      %c0_186 = arith.constant 0 : index
      %c0_187 = arith.constant 0 : index
      %382 = vector.load %arg16[%c0_186, %c0_187] : memref<16x48xf32, #tpu.memory_space<vmem>>, vector<16x48xf32>
      %cst_188 = arith.constant dense<0.000000e+00> : vector<2x48xf32>
      %383 = tpu.matmul %342, %382, %cst_188 {dimension_numbers = #tpu.dot_dimension_numbers<[1], [0], [0], [1], [0, 0, 1, 1], [], []>} : vector<2x16xf32>, vector<16x48xf32>, vector<2x48xf32> -> vector<2x48xf32>
      %384 = arith.addf %381, %383 : vector<2x48xf32>
      %385 = arith.addf %384, %22 : vector<2x48xf32>
      %386 = math.tanh %385 : vector<2x48xf32>
      %387 = vector.extract_strided_slice %386 {offsets = [0, 0], sizes = [2, 16], strides = [1, 1]} : vector<2x48xf32> to vector<2x16xf32>
      %388 = arith.addf %357, %387 : vector<2x16xf32>
      %389 = vector.extract_strided_slice %386 {offsets = [0, 16], sizes = [2, 16], strides = [1, 1]} : vector<2x48xf32> to vector<2x16xf32>
      %390 = arith.addf %353, %389 : vector<2x16xf32>
      %391 = vector.extract_strided_slice %386 {offsets = [0, 32], sizes = [2, 16], strides = [1, 1]} : vector<2x48xf32> to vector<2x16xf32>
      %392 = arith.addf %355, %391 : vector<2x16xf32>
      %393 = vector.extract_strided_slice %390 {offsets = [0, 0], sizes = [1, 16], strides = [1, 1]} : vector<2x16xf32> to vector<1x16xf32>
      %c0_i32_189 = arith.constant 0 : i32
      %394 = arith.addi %c0_i32_189, %284 : i32
      %395 = arith.index_cast %394 : i32 to index
      %c0_190 = arith.constant 0 : index
      %396 = vector.load %arg19[%395, %c0_190] : memref<400x16xf32, #tpu.memory_space<vmem>>, vector<1x16xf32>
      tpu.vector_store %arg19[%395, %c0_190], %393 {strides = array<i32>} : memref<400x16xf32, #tpu.memory_space<vmem>>, vector<1x16xf32>,
      %397 = vector.extract_strided_slice %392 {offsets = [0, 0], sizes = [1, 16], strides = [1, 1]} : vector<2x16xf32> to vector<1x16xf32>
      %c0_i32_191 = arith.constant 0 : i32
      %398 = arith.addi %c0_i32_191, %284 : i32
      %399 = arith.index_cast %398 : i32 to index
      %c0_192 = arith.constant 0 : index
      %400 = vector.load %arg20[%399, %c0_192] : memref<400x16xf32, #tpu.memory_space<vmem>>, vector<1x16xf32>
      tpu.vector_store %arg20[%399, %c0_192], %397 {strides = array<i32>} : memref<400x16xf32, #tpu.memory_space<vmem>>, vector<1x16xf32>,
      %c0_i32_193 = arith.constant 0 : i32
      %401 = arith.addi %c0_i32_193, %287 : i32
      %402 = arith.index_cast %401 : i32 to index
      %403 = memref.load %arg21[%402] : memref<40xi32, #tpu.memory_space<smem>>
      memref.store %284, %arg21[%402] : memref<40xi32, #tpu.memory_space<smem>>
      %c0_i32_194 = arith.constant 0 : i32
      %404 = arith.addi %c0_i32_194, %293 : i32
      %405 = arith.index_cast %404 : i32 to index
      %406 = memref.load %arg22[%405] : memref<20xi32, #tpu.memory_space<smem>>
      memref.store %284, %arg22[%405] : memref<20xi32, #tpu.memory_space<smem>>
      %407 = vector.extract_strided_slice %390 {offsets = [1, 0], sizes = [1, 16], strides = [1, 1]} : vector<2x16xf32> to vector<1x16xf32>
      %c200_i32_195 = arith.constant 200 : i32
      %408 = arith.addi %c200_i32_195, %284 : i32
      %409 = arith.index_cast %408 : i32 to index
      %c0_196 = arith.constant 0 : index
      %410 = vector.load %arg19[%409, %c0_196] : memref<400x16xf32, #tpu.memory_space<vmem>>, vector<1x16xf32>
      tpu.vector_store %arg19[%409, %c0_196], %407 {strides = array<i32>} : memref<400x16xf32, #tpu.memory_space<vmem>>, vector<1x16xf32>,
      %411 = vector.extract_strided_slice %392 {offsets = [1, 0], sizes = [1, 16], strides = [1, 1]} : vector<2x16xf32> to vector<1x16xf32>
      %c200_i32_197 = arith.constant 200 : i32
      %412 = arith.addi %c200_i32_197, %284 : i32
      %413 = arith.index_cast %412 : i32 to index
      %c0_198 = arith.constant 0 : index
      %414 = vector.load %arg20[%413, %c0_198] : memref<400x16xf32, #tpu.memory_space<vmem>>, vector<1x16xf32>
      tpu.vector_store %arg20[%413, %c0_198], %411 {strides = array<i32>} : memref<400x16xf32, #tpu.memory_space<vmem>>, vector<1x16xf32>,
      %c20_i32_199 = arith.constant 20 : i32
      %415 = arith.addi %c20_i32_199, %290 : i32
      %416 = arith.index_cast %415 : i32 to index
      %417 = memref.load %arg21[%416] : memref<40xi32, #tpu.memory_space<smem>>
      memref.store %284, %arg21[%416] : memref<40xi32, #tpu.memory_space<smem>>
      %c10_i32_200 = arith.constant 10 : i32
      %418 = arith.addi %c10_i32_200, %296 : i32
      %419 = arith.index_cast %418 : i32 to index
      %420 = memref.load %arg22[%419] : memref<20xi32, #tpu.memory_space<smem>>
      memref.store %284, %arg22[%419] : memref<20xi32, #tpu.memory_space<smem>>
      scf.yield %388, %379 : vector<2x16xf32>, vector<2x199xf32>
    }
    %c99_i32_30 = arith.constant 99 : i32
    %c198 = arith.constant 198 : index
    %29 = memref.load %arg1[%c198] : memref<398xi32, #tpu.memory_space<smem>>
    %c397 = arith.constant 397 : index
    %30 = memref.load %arg1[%c397] : memref<398xi32, #tpu.memory_space<smem>>
    %c198_31 = arith.constant 198 : index
    %31 = memref.load %arg2[%c198_31] : memref<398xi32, #tpu.memory_space<smem>>
    %c397_32 = arith.constant 397 : index
    %32 = memref.load %arg2[%c397_32] : memref<398xi32, #tpu.memory_space<smem>>
    %c0_i32_33 = arith.constant 0 : i32
    %33 = arith.addi %c0_i32_33, %29 : i32
    %34 = arith.index_cast %33 : i32 to index
    %35 = memref.load %arg21[%34] : memref<40xi32, #tpu.memory_space<smem>>
    %c20_i32_34 = arith.constant 20 : i32
    %36 = arith.addi %c20_i32_34, %30 : i32
    %37 = arith.index_cast %36 : i32 to index
    %38 = memref.load %arg21[%37] : memref<40xi32, #tpu.memory_space<smem>>
    %c0_i32_35 = arith.constant 0 : i32
    %39 = arith.addi %c0_i32_35, %31 : i32
    %40 = arith.index_cast %39 : i32 to index
    %41 = memref.load %arg22[%40] : memref<20xi32, #tpu.memory_space<smem>>
    %c10_i32 = arith.constant 10 : i32
    %42 = arith.addi %c10_i32, %32 : i32
    %43 = arith.index_cast %42 : i32 to index
    %44 = memref.load %arg22[%43] : memref<20xi32, #tpu.memory_space<smem>>
    %c0_i32_36 = arith.constant 0 : i32
    %45 = arith.addi %c0_i32_36, %35 : i32
    %46 = arith.index_cast %45 : i32 to index
    %c0_37 = arith.constant 0 : index
    %47 = vector.load %arg19[%46, %c0_37] : memref<400x16xf32, #tpu.memory_space<vmem>>, vector<1x16xf32>
    %c200_i32 = arith.constant 200 : i32
    %48 = arith.addi %c200_i32, %38 : i32
    %49 = arith.index_cast %48 : i32 to index
    %c0_38 = arith.constant 0 : index
    %50 = vector.load %arg19[%49, %c0_38] : memref<400x16xf32, #tpu.memory_space<vmem>>, vector<1x16xf32>
    %51 = tpu.concatenate %47, %50 in 0 : vector<1x16xf32>, vector<1x16xf32> -> vector<2x16xf32>
    %c198_i32 = arith.constant 198 : i32
    %52 = arith.subi %c198_i32, %35 : i32
    %53 = arith.index_cast %52 : i32 to index
    %c0_39 = arith.constant 0 : index
    %54 = vector.load %arg5[%53, %c0_39] : memref<200x16xf32, #tpu.memory_space<vmem>>, vector<1x16xf32>
    %c198_i32_40 = arith.constant 198 : i32
    %55 = arith.subi %c198_i32_40, %38 : i32
    %56 = arith.index_cast %55 : i32 to index
    %c0_41 = arith.constant 0 : index
    %57 = vector.load %arg5[%56, %c0_41] : memref<200x16xf32, #tpu.memory_space<vmem>>, vector<1x16xf32>
    %58 = tpu.concatenate %54, %57 in 0 : vector<1x16xf32>, vector<1x16xf32> -> vector<2x16xf32>
    %c0_i32_42 = arith.constant 0 : i32
    %59 = arith.addi %c0_i32_42, %41 : i32
    %60 = arith.index_cast %59 : i32 to index
    %c0_43 = arith.constant 0 : index
    %61 = vector.load %arg20[%60, %c0_43] : memref<400x16xf32, #tpu.memory_space<vmem>>, vector<1x16xf32>
    %c200_i32_44 = arith.constant 200 : i32
    %62 = arith.addi %c200_i32_44, %44 : i32
    %63 = arith.index_cast %62 : i32 to index
    %c0_45 = arith.constant 0 : index
    %64 = vector.load %arg20[%63, %c0_45] : memref<400x16xf32, #tpu.memory_space<vmem>>, vector<1x16xf32>
    %65 = tpu.concatenate %61, %64 in 0 : vector<1x16xf32>, vector<1x16xf32> -> vector<2x16xf32>
    %c198_i32_46 = arith.constant 198 : i32
    %66 = arith.subi %c198_i32_46, %41 : i32
    %67 = arith.index_cast %66 : i32 to index
    %c0_47 = arith.constant 0 : index
    %68 = vector.load %arg5[%67, %c0_47] : memref<200x16xf32, #tpu.memory_space<vmem>>, vector<1x16xf32>
    %c198_i32_48 = arith.constant 198 : i32
    %69 = arith.subi %c198_i32_48, %44 : i32
    %70 = arith.index_cast %69 : i32 to index
    %c0_49 = arith.constant 0 : index
    %71 = vector.load %arg5[%70, %c0_49] : memref<200x16xf32, #tpu.memory_space<vmem>>, vector<1x16xf32>
    %72 = tpu.concatenate %68, %71 in 0 : vector<1x16xf32>, vector<1x16xf32> -> vector<2x16xf32>
    %c198_50 = arith.constant 198 : index
    %c0_51 = arith.constant 0 : index
    %c0_52 = arith.constant 0 : index
    %73 = vector.load %arg3[%c198_50, %c0_51, %c0_52] : memref<199x2x16xf32, #tpu.memory_space<vmem>>, vector<1x2x16xf32>
    %74 = vector.shape_cast %73 : vector<1x2x16xf32> to vector<2x16xf32>
    %c198_53 = arith.constant 198 : index
    %c0_54 = arith.constant 0 : index
    %c0_55 = arith.constant 0 : index
    %75 = vector.load %arg4[%c198_53, %c0_54, %c0_55] : memref<199x2x16xf32, #tpu.memory_space<vmem>>, vector<1x2x16xf32>
    %76 = vector.shape_cast %75 : vector<1x2x16xf32> to vector<2x16xf32>
    %77 = tpu.concatenate %51, %58, %65, %72, %28#0 in 1 : vector<2x16xf32>, vector<2x16xf32>, vector<2x16xf32>, vector<2x16xf32>, vector<2x16xf32> -> vector<2x80xf32>
    %c0_56 = arith.constant 0 : index
    %c0_57 = arith.constant 0 : index
    %78 = vector.load %arg9[%c0_56, %c0_57] : memref<80x48xf32, #tpu.memory_space<vmem>>, vector<80x48xf32>
    %cst_58 = arith.constant dense<0.000000e+00> : vector<2x48xf32>
    %79 = tpu.matmul %77, %78, %cst_58 {dimension_numbers = #tpu.dot_dimension_numbers<[1], [0], [0], [1], [0, 0, 1, 1], [], []>} : vector<2x80xf32>, vector<80x48xf32>, vector<2x48xf32> -> vector<2x48xf32>
    %80 = arith.addf %79, %13 : vector<2x48xf32>
    %81 = arith.negf %80 : vector<2x48xf32>
    %82 = math.exp %81 : vector<2x48xf32>
    %cst_59 = arith.constant 1.000000e+00 : f32
    %83 = vector.broadcast %cst_59 : f32 to vector<2x48xf32>
    %84 = arith.addf %83, %82 : vector<2x48xf32>
    %85 = arith.divf %83, %84 : vector<2x48xf32>
    %86 = vector.extract_strided_slice %85 {offsets = [0, 0], sizes = [2, 16], strides = [1, 1]} : vector<2x48xf32> to vector<2x16xf32>
    %87 = arith.mulf %51, %86 : vector<2x16xf32>
    %88 = vector.extract_strided_slice %85 {offsets = [0, 16], sizes = [2, 16], strides = [1, 1]} : vector<2x48xf32> to vector<2x16xf32>
    %89 = arith.mulf %65, %88 : vector<2x16xf32>
    %90 = vector.extract_strided_slice %85 {offsets = [0, 32], sizes = [2, 16], strides = [1, 1]} : vector<2x48xf32> to vector<2x16xf32>
    %91 = arith.mulf %28#0, %90 : vector<2x16xf32>
    %92 = tpu.concatenate %91, %87, %89 in 1 : vector<2x16xf32>, vector<2x16xf32>, vector<2x16xf32> -> vector<2x48xf32>
    %93 = tpu.concatenate %92, %74 in 1 : vector<2x48xf32>, vector<2x16xf32> -> vector<2x64xf32>
    %c0_60 = arith.constant 0 : index
    %c0_61 = arith.constant 0 : index
    %94 = vector.load %arg11[%c0_60, %c0_61] : memref<64x16xf32, #tpu.memory_space<vmem>>, vector<64x16xf32>
    %cst_62 = arith.constant dense<0.000000e+00> : vector<2x16xf32>
    %95 = tpu.matmul %93, %94, %cst_62 {dimension_numbers = #tpu.dot_dimension_numbers<[1], [0], [0], [1], [0, 0, 1, 1], [], []>} : vector<2x64xf32>, vector<64x16xf32>, vector<2x16xf32> -> vector<2x16xf32>
    %96 = arith.addf %95, %16 : vector<2x16xf32>
    %cst_63 = arith.constant 0.000000e+00 : f32
    %97 = vector.broadcast %cst_63 : f32 to vector<2x16xf32>
    %98 = arith.maximumf %96, %97 : vector<2x16xf32>
    %c0_64 = arith.constant 0 : index
    %c0_65 = arith.constant 0 : index
    %99 = vector.load %arg13[%c0_64, %c0_65] : memref<16x1xf32, #tpu.memory_space<vmem>>, vector<16x1xf32>
    %cst_66 = arith.constant dense<0.000000e+00> : vector<2x1xf32>
    %100 = tpu.matmul %98, %99, %cst_66 {dimension_numbers = #tpu.dot_dimension_numbers<[1], [0], [0], [1], [0, 0, 1, 1], [], []>} : vector<2x16xf32>, vector<16x1xf32>, vector<2x1xf32> -> vector<2x1xf32>
    %101 = arith.addf %100, %19 : vector<2x1xf32>
    %102 = arith.negf %101 : vector<2x1xf32>
    %103 = math.exp %102 : vector<2x1xf32>
    %cst_67 = arith.constant 1.000000e+00 : f32
    %104 = vector.broadcast %cst_67 : f32 to vector<2x1xf32>
    %105 = arith.addf %104, %103 : vector<2x1xf32>
    %106 = arith.divf %104, %105 : vector<2x1xf32>
    %c198_i32_68 = arith.constant 198 : i32
    %107 = vector.broadcast %c198_i32_68 : i32 to vector<1x199xi32>
    %108 = arith.cmpi eq, %10, %107 : vector<1x199xi32>
    %109 = vector.shape_cast %108 : vector<1x199xi1> to vector<1x199xi1>
    %110 = vector.broadcast %109 : vector<1x199xi1> to vector<2x199xi1>
    %111 = vector.shape_cast %106 : vector<2x1xf32> to vector<2x1xf32>
    %112 = vector.broadcast %111 : vector<2x1xf32> to vector<2x199xf32>
    %113 = arith.select %110, %112, %28#1 : vector<2x199xi1>, vector<2x199xf32>
    %c0_69 = arith.constant 0 : index
    %c0_70 = arith.constant 0 : index
    %114 = vector.load %arg15[%c0_69, %c0_70] : memref<48x48xf32, #tpu.memory_space<vmem>>, vector<48x48xf32>
    %cst_71 = arith.constant dense<0.000000e+00> : vector<2x48xf32>
    %115 = tpu.matmul %92, %114, %cst_71 {dimension_numbers = #tpu.dot_dimension_numbers<[1], [0], [0], [1], [0, 0, 1, 1], [], []>} : vector<2x48xf32>, vector<48x48xf32>, vector<2x48xf32> -> vector<2x48xf32>
    %c0_72 = arith.constant 0 : index
    %c0_73 = arith.constant 0 : index
    %116 = vector.load %arg16[%c0_72, %c0_73] : memref<16x48xf32, #tpu.memory_space<vmem>>, vector<16x48xf32>
    %cst_74 = arith.constant dense<0.000000e+00> : vector<2x48xf32>
    %117 = tpu.matmul %76, %116, %cst_74 {dimension_numbers = #tpu.dot_dimension_numbers<[1], [0], [0], [1], [0, 0, 1, 1], [], []>} : vector<2x16xf32>, vector<16x48xf32>, vector<2x48xf32> -> vector<2x48xf32>
    %118 = arith.addf %115, %117 : vector<2x48xf32>
    %119 = arith.addf %118, %22 : vector<2x48xf32>
    %120 = math.tanh %119 : vector<2x48xf32>
    %121 = vector.extract_strided_slice %120 {offsets = [0, 16], sizes = [2, 16], strides = [1, 1]} : vector<2x48xf32> to vector<2x16xf32>
    %122 = arith.addf %87, %121 : vector<2x16xf32>
    %123 = vector.extract_strided_slice %120 {offsets = [0, 32], sizes = [2, 16], strides = [1, 1]} : vector<2x48xf32> to vector<2x16xf32>
    %124 = arith.addf %89, %123 : vector<2x16xf32>
    %125 = vector.extract_strided_slice %122 {offsets = [0, 0], sizes = [1, 16], strides = [1, 1]} : vector<2x16xf32> to vector<1x16xf32>
    %c198_75 = arith.constant 198 : index
    %c0_76 = arith.constant 0 : index
    %126 = vector.load %arg19[%c198_75, %c0_76] : memref<400x16xf32, #tpu.memory_space<vmem>>, vector<1x16xf32>
    tpu.vector_store %arg19[%c198_75, %c0_76], %125 {strides = array<i32>} : memref<400x16xf32, #tpu.memory_space<vmem>>, vector<1x16xf32>,
    %127 = vector.extract_strided_slice %124 {offsets = [0, 0], sizes = [1, 16], strides = [1, 1]} : vector<2x16xf32> to vector<1x16xf32>
    %c198_77 = arith.constant 198 : index
    %c0_78 = arith.constant 0 : index
    %128 = vector.load %arg20[%c198_77, %c0_78] : memref<400x16xf32, #tpu.memory_space<vmem>>, vector<1x16xf32>
    tpu.vector_store %arg20[%c198_77, %c0_78], %127 {strides = array<i32>} : memref<400x16xf32, #tpu.memory_space<vmem>>, vector<1x16xf32>,
    %c0_i32_79 = arith.constant 0 : i32
    %129 = arith.addi %c0_i32_79, %29 : i32
    %c198_i32_80 = arith.constant 198 : i32
    %130 = arith.index_cast %129 : i32 to index
    %131 = memref.load %arg21[%130] : memref<40xi32, #tpu.memory_space<smem>>
    memref.store %c198_i32_80, %arg21[%130] : memref<40xi32, #tpu.memory_space<smem>>
    %c0_i32_81 = arith.constant 0 : i32
    %132 = arith.addi %c0_i32_81, %31 : i32
    %c198_i32_82 = arith.constant 198 : i32
    %133 = arith.index_cast %132 : i32 to index
    %134 = memref.load %arg22[%133] : memref<20xi32, #tpu.memory_space<smem>>
    memref.store %c198_i32_82, %arg22[%133] : memref<20xi32, #tpu.memory_space<smem>>
    %135 = vector.extract_strided_slice %122 {offsets = [1, 0], sizes = [1, 16], strides = [1, 1]} : vector<2x16xf32> to vector<1x16xf32>
    %c398 = arith.constant 398 : index
    %c0_83 = arith.constant 0 : index
    %136 = vector.load %arg19[%c398, %c0_83] : memref<400x16xf32, #tpu.memory_space<vmem>>, vector<1x16xf32>
    tpu.vector_store %arg19[%c398, %c0_83], %135 {strides = array<i32>} : memref<400x16xf32, #tpu.memory_space<vmem>>, vector<1x16xf32>,
    %137 = vector.extract_strided_slice %124 {offsets = [1, 0], sizes = [1, 16], strides = [1, 1]} : vector<2x16xf32> to vector<1x16xf32>
    %c398_84 = arith.constant 398 : index
    %c0_85 = arith.constant 0 : index
    %138 = vector.load %arg20[%c398_84, %c0_85] : memref<400x16xf32, #tpu.memory_space<vmem>>, vector<1x16xf32>
    tpu.vector_store %arg20[%c398_84, %c0_85], %137 {strides = array<i32>} : memref<400x16xf32, #tpu.memory_space<vmem>>, vector<1x16xf32>,
    %c20_i32_86 = arith.constant 20 : i32
    %139 = arith.addi %c20_i32_86, %30 : i32
    %c198_i32_87 = arith.constant 198 : i32
    %140 = arith.index_cast %139 : i32 to index
    %141 = memref.load %arg21[%140] : memref<40xi32, #tpu.memory_space<smem>>
    memref.store %c198_i32_87, %arg21[%140] : memref<40xi32, #tpu.memory_space<smem>>
    %c10_i32_88 = arith.constant 10 : i32
    %142 = arith.addi %c10_i32_88, %32 : i32
    %c198_i32_89 = arith.constant 198 : i32
    %143 = arith.index_cast %142 : i32 to index
    %144 = memref.load %arg22[%143] : memref<20xi32, #tpu.memory_space<smem>>
    memref.store %c198_i32_89, %arg22[%143] : memref<20xi32, #tpu.memory_space<smem>>
    %c0_90 = arith.constant 0 : index
    %c0_91 = arith.constant 0 : index
    %145 = vector.load %arg18[%c0_90, %c0_91] : memref<2x199xf32, #tpu.memory_space<vmem>>, vector<2x199xf32>
    tpu.vector_store %arg18[%c0_90, %c0_91], %113 {strides = array<i32>} : memref<2x199xf32, #tpu.memory_space<vmem>>, vector<2x199xf32>,
    return
  }
  func.func @transform_0(%arg0: i32, %arg1: memref<398xi32, #tpu.memory_space<smem>>, %arg2: memref<398xi32, #tpu.memory_space<smem>>) -> (i32, i32, i32) {
    %c0_i32 = arith.constant 0 : i32
    %c0_i32_0 = arith.constant 0 : i32
    %c0_i32_1 = arith.constant 0 : i32
    %c0_i32_2 = arith.constant 0 : i32
    return %c0_i32, %c0_i32_0, %c0_i32_1 : i32, i32, i32
  }
  func.func @transform_1(%arg0: i32, %arg1: memref<398xi32, #tpu.memory_space<smem>>, %arg2: memref<398xi32, #tpu.memory_space<smem>>) -> (i32, i32, i32) {
    %c0_i32 = arith.constant 0 : i32
    %c0_i32_0 = arith.constant 0 : i32
    %c0_i32_1 = arith.constant 0 : i32
    %c0_i32_2 = arith.constant 0 : i32
    return %c0_i32, %c0_i32_0, %c0_i32_1 : i32, i32, i32
  }
  func.func @transform_2(%arg0: i32, %arg1: memref<398xi32, #tpu.memory_space<smem>>, %arg2: memref<398xi32, #tpu.memory_space<smem>>) -> (i32, i32) {
    %c0_i32 = arith.constant 0 : i32
    %c0_i32_0 = arith.constant 0 : i32
    %c0_i32_1 = arith.constant 0 : i32
    return %c0_i32, %c0_i32_0 : i32, i32
  }
  func.func @transform_3(%arg0: i32, %arg1: memref<398xi32, #tpu.memory_space<smem>>, %arg2: memref<398xi32, #tpu.memory_space<smem>>) -> (i32, i32) {
    %c0_i32 = arith.constant 0 : i32
    %c0_i32_0 = arith.constant 0 : i32
    %c0_i32_1 = arith.constant 0 : i32
    return %c0_i32, %c0_i32_0 : i32, i32
  }
  func.func @transform_4(%arg0: i32, %arg1: memref<398xi32, #tpu.memory_space<smem>>, %arg2: memref<398xi32, #tpu.memory_space<smem>>) -> (i32, i32) {
    %c0_i32 = arith.constant 0 : i32
    %c0_i32_0 = arith.constant 0 : i32
    %c0_i32_1 = arith.constant 0 : i32
    return %c0_i32, %c0_i32_0 : i32, i32
  }
  func.func @transform_5(%arg0: i32, %arg1: memref<398xi32, #tpu.memory_space<smem>>, %arg2: memref<398xi32, #tpu.memory_space<smem>>) -> (i32, i32) {
    %c0_i32 = arith.constant 0 : i32
    %c0_i32_0 = arith.constant 0 : i32
    %c0_i32_1 = arith.constant 0 : i32
    return %c0_i32, %c0_i32_0 : i32, i32
  }
  func.func @transform_6(%arg0: i32, %arg1: memref<398xi32, #tpu.memory_space<smem>>, %arg2: memref<398xi32, #tpu.memory_space<smem>>) -> (i32, i32) {
    %c0_i32 = arith.constant 0 : i32
    %c0_i32_0 = arith.constant 0 : i32
    %c0_i32_1 = arith.constant 0 : i32
    return %c0_i32, %c0_i32_0 : i32, i32
  }
  func.func @transform_7(%arg0: i32, %arg1: memref<398xi32, #tpu.memory_space<smem>>, %arg2: memref<398xi32, #tpu.memory_space<smem>>) -> (i32, i32) {
    %c0_i32 = arith.constant 0 : i32
    %c0_i32_0 = arith.constant 0 : i32
    %c0_i32_1 = arith.constant 0 : i32
    return %c0_i32, %c0_i32_0 : i32, i32
  }
  func.func @transform_8(%arg0: i32, %arg1: memref<398xi32, #tpu.memory_space<smem>>, %arg2: memref<398xi32, #tpu.memory_space<smem>>) -> (i32, i32) {
    %c0_i32 = arith.constant 0 : i32
    %c0_i32_0 = arith.constant 0 : i32
    %c0_i32_1 = arith.constant 0 : i32
    return %c0_i32, %c0_i32_0 : i32, i32
  }
  func.func @transform_9(%arg0: i32, %arg1: memref<398xi32, #tpu.memory_space<smem>>, %arg2: memref<398xi32, #tpu.memory_space<smem>>) -> (i32, i32) {
    %c0_i32 = arith.constant 0 : i32
    %c0_i32_0 = arith.constant 0 : i32
    %c0_i32_1 = arith.constant 0 : i32
    return %c0_i32, %c0_i32_0 : i32, i32
  }
  func.func @transform_10(%arg0: i32, %arg1: memref<398xi32, #tpu.memory_space<smem>>, %arg2: memref<398xi32, #tpu.memory_space<smem>>) -> (i32, i32) {
    %c0_i32 = arith.constant 0 : i32
    %c0_i32_0 = arith.constant 0 : i32
    %c0_i32_1 = arith.constant 0 : i32
    return %c0_i32, %c0_i32_0 : i32, i32
  }
  func.func @transform_11(%arg0: i32, %arg1: memref<398xi32, #tpu.memory_space<smem>>, %arg2: memref<398xi32, #tpu.memory_space<smem>>) -> (i32, i32) {
    %c0_i32 = arith.constant 0 : i32
    %c0_i32_0 = arith.constant 0 : i32
    %c0_i32_1 = arith.constant 0 : i32
    return %c0_i32, %c0_i32_0 : i32, i32
  }
  func.func @transform_12(%arg0: i32, %arg1: memref<398xi32, #tpu.memory_space<smem>>, %arg2: memref<398xi32, #tpu.memory_space<smem>>) -> (i32, i32) {
    %c0_i32 = arith.constant 0 : i32
    %c0_i32_0 = arith.constant 0 : i32
    %c0_i32_1 = arith.constant 0 : i32
    return %c0_i32, %c0_i32_0 : i32, i32
  }
  func.func @transform_13(%arg0: i32, %arg1: memref<398xi32, #tpu.memory_space<smem>>, %arg2: memref<398xi32, #tpu.memory_space<smem>>) -> (i32, i32) {
    %c0_i32 = arith.constant 0 : i32
    %c0_i32_0 = arith.constant 0 : i32
    %c0_i32_1 = arith.constant 0 : i32
    return %c0_i32, %c0_i32_0 : i32, i32
  }
  func.func @transform_14(%arg0: i32, %arg1: memref<398xi32, #tpu.memory_space<smem>>, %arg2: memref<398xi32, #tpu.memory_space<smem>>) -> (i32, i32) {
    %c0_i32 = arith.constant 0 : i32
    %c0_i32_0 = arith.constant 0 : i32
    %c0_i32_1 = arith.constant 0 : i32
    return %c0_i32, %c0_i32_0 : i32, i32
  }
  func.func @transform_15(%arg0: i32, %arg1: memref<398xi32, #tpu.memory_space<smem>>, %arg2: memref<398xi32, #tpu.memory_space<smem>>) -> (i32, i32) {
    %c0_i32 = arith.constant 0 : i32
    %c0_i32_0 = arith.constant 0 : i32
    %c0_i32_1 = arith.constant 0 : i32
    return %c0_i32, %c0_i32_0 : i32, i32
  }
}

</mosaic_0001>

<bundles_post_ra>
// kernel: tpu_custom_call.1
= control target key start
LH: loop header
LB: loop body
LE: loop exit
PB: predicated region body
PF: predicated region fallthrough
CT: control target
= control target key end

     0   :  { %s3849_s0 = inlined_call_operand.vmem [shape: s32[398], index: 0, kind: input, shape index: {}]   ;;  %s3850_s2 = inlined_call_operand.vmem [shape: f32[199,2,16], index: 2, kind: input, shape index: {}]   ;;  %s3851_s3 = inlined_call_operand.vmem [shape: f32[199,2,16], index: 3, kind: input, shape index: {}]   ;;  %s3852_s4 = inlined_call_operand.vmem [shape: f32[200,16], index: 4, kind: input, shape index: {}]   ;;  %s3853_s5 = inlined_call_operand.vmem [shape: f32[1,16], index: 5, kind: input, shape index: {}]   ;;  %s3854_s6 = inlined_call_operand.vmem [shape: f32[200,16], index: 6, kind: input, shape index: {}]   ;;  %s3855_s7 = inlined_call_operand.vmem [shape: f32[200,16], index: 7, kind: input, shape index: {}]   ;;  %s3856_s8 = inlined_call_operand.vmem [shape: f32[80,48], index: 8, kind: input, shape index: {}]   ;;  %s3857_s9 = inlined_call_operand.vmem [shape: f32[1,48], index: 9, kind: input, shape index: {}]   ;;  %s3858_s10 = inlined_call_operand.vmem [shape: f32[64,16], index: 10, kind: input, shape index: {}]   ;;  %s3859_s11 = inlined_call_operand.vmem [shape: f32[1,16], index: 11, kind: input, shape index: {}]   ;;  %s3860_s12 = inlined_call_operand.vmem [shape: f32[16,1], index: 12, kind: input, shape index: {}]   ;;  %s3861_s14 = inlined_call_operand.vmem [shape: f32[48,48], index: 14, kind: input, shape index: {}]   ;;  %s3862_s15 = inlined_call_operand.vmem [shape: f32[16,48], index: 15, kind: input, shape index: {}]   ;;  %s3863_s16 = inlined_call_operand.vmem [shape: f32[1,48], index: 16, kind: input, shape index: {}]   ;;  %s3864_s17 = inlined_call_operand.hbm [shape: f32[2,199], index: 17, kind: output, shape index: {}]   ;;  %s3865_s1 = inlined_call_operand.vmem [shape: s32[398], index: 1, kind: input, shape index: {}]   ;;  %s3866_s13 = inlined_call_operand.<no memory space> [shape: f32[1,1], index: 13, kind: input, shape index: {}]  }
   0x1   :  { %3876 = sst [smem:[#allocation14_spill]] %s3849_s0  ;;  %s26_s29 = sshll.u32 %s3865_s1, 4  ;;  %v30_v0 = vstv %s3866_s13  ;;  %s27_s29 = int_to_ptr.vmem [resolvable:$true] %s26_s29 }
   0x2   :  { %3877 = sst [smem:[#allocation15_spill]] %s3850_s2  ;;  %31 = vst [vmem:[#allocation9] sm:$0x1] %v30_v0 }
   0x3   :  { %3878 = sst [smem:[#allocation16_spill]] %s3851_s3 }
   0x4   :  { %3879 = sst [smem:[#allocation17_spill]] %s3862_s15 }
   0x5   :  { %3880 = sst [smem:[#allocation18_spill]] %s3864_s17 }
   0x6   :  { %s3881_s26 = sld [smem:[#allocation14_spill]] }
   0xc   :  { %s22_s3 = sshll.u32 %s3881_s26, 4  ;;  %s23_s3 = int_to_ptr.vmem [resolvable:$true] %s22_s3 }
   0xd   :  { %s2596_s30 = scalar_lea.vmem %s23_s3, 64  ;;  %p2601_p1 = scmp.lt.s32.totalorder %s23_s3, %s23_s3 }
   0xe   :  { %p2597_p0 = scmp.ne.s32.totalorder %s23_s3, %s2596_s30  ;;  %p2602_p2 = scmp.lt.s32.totalorder %s2596_s30, %s2596_s30 }
  0x10   :  { %p2603_p3 = por %p2602_p2, %p2601_p1 }
  0x12   :  { %p2604_p4 = pnand %p2603_p3, %p2597_p0 }
  0x14   :  { %2607 = shalt.err (!%p2604_p4)  }
  0x15   :  { %s2692_s18 = smov [#allocation7]   ;;  %s2608_s19 = scalar_lea.vmem %s27_s29, 64 }
  0x16   :  { %25 = dma.vmem_to_smem %s23_s3, 64, %s2692_s18, [#allocation6] }
  0x17   :  { %p2609_p5 = scmp.ne.s32.totalorder %s27_s29, %s2608_s19  ;;  %p2613_p6 = scmp.lt.s32.totalorder %s27_s29, %s27_s29 }
  0x18   :  { %p2614_p7 = scmp.lt.s32.totalorder %s2608_s19, %s2608_s19 }
  0x1a   :  { %p2615_p8 = por %p2614_p7, %p2613_p6 }
  0x1c   :  { %p2616_p9 = pnand %p2615_p8, %p2609_p5 }
  0x1e   :  { %2619 = shalt.err (!%p2616_p9)  }
  0x1f   :  { %s2693_s1 = smov [#allocation8]  }
  0x20   :  { %29 = dma.vmem_to_smem %s27_s29, 64, %s2693_s1, [#allocation6] }
  0x21   :  { %2664 = dma.done.wait [#allocation6], 128 }
  0x22   :  { %2665 = vsyncadd [#allocation6], 4294967168 }
  0x23   :  { %33 = sfence }
  0x24   :  { %34 = vsyncpa [#allocation11], 0  ;;  %v65_v1 = vld [vmem:[%s3854_s6] sm:$0xff]  ;;  %vm90_vm0 = vcmask 130048   ;;  %v66_v2 = vld [vmem:[%s3854_s6 + $0x8] sm:$0xff]  ;;  %s2668_s2 = smov 0  }
  0x25   :  { %91 = vst.msk [vmem:[#allocation2] sm:$0xff] %vm90_vm0, %v65_v1  ;;  %92 = vst.msk [vmem:[#allocation2 + $0x8] sm:$0xff] %vm90_vm0, %v66_v2  ;;  %v67_v3 = vld [vmem:[%s3854_s6 + $0x10] sm:$0xff]  ;;  %v68_v4 = vld [vmem:[%s3854_s6 + $0x18] sm:$0xff] }
  0x26   :  { %v69_v5 = vld [vmem:[%s3854_s6 + $0x20] sm:$0xff]  ;;  %191 = vst.msk [vmem:[#allocation2 + $0xc8] sm:$0xff] %vm90_vm0, %v65_v1  ;;  %192 = vst.msk [vmem:[#allocation2 + $0xd0] sm:$0xff] %vm90_vm0, %v66_v2  ;;  %v70_v6 = vld [vmem:[%s3854_s6 + $0x28] sm:$0xff] }
  0x27   :  { %93 = vst.msk [vmem:[#allocation2 + $0x10] sm:$0xff] %vm90_vm0, %v67_v3  ;;  %94 = vst.msk [vmem:[#allocation2 + $0x18] sm:$0xff] %vm90_vm0, %v68_v4  ;;  %v71_v7 = vld [vmem:[%s3854_s6 + $0x30] sm:$0xff]  ;;  %v72_v8 = vld [vmem:[%s3854_s6 + $0x38] sm:$0xff] }
  0x28   :  { %95 = vst.msk [vmem:[#allocation2 + $0x20] sm:$0xff] %vm90_vm0, %v69_v5  ;;  %193 = vst.msk [vmem:[#allocation2 + $0xd8] sm:$0xff] %vm90_vm0, %v67_v3  ;;  %v73_v9 = vld [vmem:[%s3854_s6 + $0x40] sm:$0xff]  ;;  %v74_v10 = vld [vmem:[%s3854_s6 + $0x48] sm:$0xff] }
  0x29   :  { %194 = vst.msk [vmem:[#allocation2 + $0xe0] sm:$0xff] %vm90_vm0, %v68_v4  ;;  %195 = vst.msk [vmem:[#allocation2 + $0xe8] sm:$0xff] %vm90_vm0, %v69_v5  ;;  %v75_v11 = vld [vmem:[%s3854_s6 + $0x50] sm:$0xff]  ;;  %v76_v12 = vld [vmem:[%s3854_s6 + $0x58] sm:$0xff] }
  0x2a   :  { %96 = vst.msk [vmem:[#allocation2 + $0x28] sm:$0xff] %vm90_vm0, %v70_v6  ;;  %97 = vst.msk [vmem:[#allocation2 + $0x30] sm:$0xff] %vm90_vm0, %v71_v7  ;;  %v77_v13 = vld [vmem:[%s3854_s6 + $0x60] sm:$0xff]  ;;  %v78_v14 = vld [vmem:[%s3854_s6 + $0x68] sm:$0xff] }
  0x2b   :  { %98 = vst.msk [vmem:[#allocation2 + $0x38] sm:$0xff] %vm90_vm0, %v72_v8  ;;  %196 = vst.msk [vmem:[#allocation2 + $0xf0] sm:$0xff] %vm90_vm0, %v70_v6  ;;  %v79_v15 = vld [vmem:[%s3854_s6 + $0x70] sm:$0xff]  ;;  %v80_v16 = vld [vmem:[%s3854_s6 + $0x78] sm:$0xff] }
  0x2c   :  { %197 = vst.msk [vmem:[#allocation2 + $0xf8] sm:$0xff] %vm90_vm0, %v71_v7  ;;  %198 = vst.msk [vmem:[#allocation2 + $0x100] sm:$0xff] %vm90_vm0, %v72_v8  ;;  %v81_v17 = vld [vmem:[%s3854_s6 + $0x80] sm:$0xff]  ;;  %v82_v18 = vld [vmem:[%s3854_s6 + $0x88] sm:$0xff] }
  0x2d   :  { %99 = vst.msk [vmem:[#allocation2 + $0x40] sm:$0xff] %vm90_vm0, %v73_v9  ;;  %100 = vst.msk [vmem:[#allocation2 + $0x48] sm:$0xff] %vm90_vm0, %v74_v10  ;;  %v83_v19 = vld [vmem:[%s3854_s6 + $0x90] sm:$0xff]  ;;  %v84_v20 = vld [vmem:[%s3854_s6 + $0x98] sm:$0xff] }
  0x2e   :  { %101 = vst.msk [vmem:[#allocation2 + $0x50] sm:$0xff] %vm90_vm0, %v75_v11  ;;  %199 = vst.msk [vmem:[#allocation2 + $0x108] sm:$0xff] %vm90_vm0, %v73_v9  ;;  %v85_v21 = vld [vmem:[%s3854_s6 + $0xa0] sm:$0xff]  ;;  %v86_v22 = vld [vmem:[%s3854_s6 + $0xa8] sm:$0xff] }
  0x2f   :  { %200 = vst.msk [vmem:[#allocation2 + $0x110] sm:$0xff] %vm90_vm0, %v74_v10  ;;  %201 = vst.msk [vmem:[#allocation2 + $0x118] sm:$0xff] %vm90_vm0, %v75_v11  ;;  %v87_v23 = vld [vmem:[%s3854_s6 + $0xb0] sm:$0xff]  ;;  %v88_v24 = vld [vmem:[%s3854_s6 + $0xb8] sm:$0xff] }
  0x30   :  { %102 = vst.msk [vmem:[#allocation2 + $0x58] sm:$0xff] %vm90_vm0, %v76_v12  ;;  %103 = vst.msk [vmem:[#allocation2 + $0x60] sm:$0xff] %vm90_vm0, %v77_v13  ;;  %v89_v25 = vld [vmem:[%s3854_s6 + $0xc0] sm:$0xff]  ;;  %v117_v27 = vld [vmem:[%s3855_s7 + $0x8] sm:$0xff] }
  0x31   :  { %104 = vst.msk [vmem:[#allocation2 + $0x68] sm:$0xff] %vm90_vm0, %v78_v14  ;;  %202 = vst.msk [vmem:[#allocation2 + $0x120] sm:$0xff] %vm90_vm0, %v76_v12  ;;  %v116_v26 = vld [vmem:[%s3855_s7] sm:$0xff]  ;;  %v118_v28 = vld [vmem:[%s3855_s7 + $0x10] sm:$0xff] }
  0x32   :  { %203 = vst.msk [vmem:[#allocation2 + $0x128] sm:$0xff] %vm90_vm0, %v77_v13  ;;  %204 = vst.msk [vmem:[#allocation2 + $0x130] sm:$0xff] %vm90_vm0, %v78_v14  ;;  %v119_v29 = vld [vmem:[%s3855_s7 + $0x18] sm:$0xff]  ;;  %v120_v30 = vld [vmem:[%s3855_s7 + $0x20] sm:$0xff] }
  0x33   :  { %105 = vst.msk [vmem:[#allocation2 + $0x70] sm:$0xff] %vm90_vm0, %v79_v15  ;;  %106 = vst.msk [vmem:[#allocation2 + $0x78] sm:$0xff] %vm90_vm0, %v80_v16  ;;  %v121_v31 = vld [vmem:[%s3855_s7 + $0x28] sm:$0xff]  ;;  %v122_v32 = vld [vmem:[%s3855_s7 + $0x30] sm:$0xff] }
  0x34   :  { %107 = vst.msk [vmem:[#allocation2 + $0x80] sm:$0xff] %vm90_vm0, %v81_v17  ;;  %205 = vst.msk [vmem:[#allocation2 + $0x138] sm:$0xff] %vm90_vm0, %v79_v15  ;;  %v123_v33 = vld [vmem:[%s3855_s7 + $0x38] sm:$0xff]  ;;  %v124_v34 = vld [vmem:[%s3855_s7 + $0x40] sm:$0xff] }
  0x35   :  { %206 = vst.msk [vmem:[#allocation2 + $0x140] sm:$0xff] %vm90_vm0, %v80_v16  ;;  %207 = vst.msk [vmem:[#allocation2 + $0x148] sm:$0xff] %vm90_vm0, %v81_v17  ;;  %v125_v35 = vld [vmem:[%s3855_s7 + $0x48] sm:$0xff]  ;;  %v126_v36 = vld [vmem:[%s3855_s7 + $0x50] sm:$0xff] }
  0x36   :  { %108 = vst.msk [vmem:[#allocation2 + $0x88] sm:$0xff] %vm90_vm0, %v82_v18  ;;  %109 = vst.msk [vmem:[#allocation2 + $0x90] sm:$0xff] %vm90_vm0, %v83_v19  ;;  %v127_v37 = vld [vmem:[%s3855_s7 + $0x58] sm:$0xff]  ;;  %v128_v38 = vld [vmem:[%s3855_s7 + $0x60] sm:$0xff] }
  0x37   :  { %110 = vst.msk [vmem:[#allocation2 + $0x98] sm:$0xff] %vm90_vm0, %v84_v20  ;;  %208 = vst.msk [vmem:[#allocation2 + $0x150] sm:$0xff] %vm90_vm0, %v82_v18  ;;  %v129_v39 = vld [vmem:[%s3855_s7 + $0x68] sm:$0xff]  ;;  %v130_v40 = vld [vmem:[%s3855_s7 + $0x70] sm:$0xff] }
  0x38   :  { %209 = vst.msk [vmem:[#allocation2 + $0x158] sm:$0xff] %vm90_vm0, %v83_v19  ;;  %210 = vst.msk [vmem:[#allocation2 + $0x160] sm:$0xff] %vm90_vm0, %v84_v20  ;;  %v131_v41 = vld [vmem:[%s3855_s7 + $0x78] sm:$0xff]  ;;  %v132_v42 = vld [vmem:[%s3855_s7 + $0x80] sm:$0xff] }
  0x39   :  { %111 = vst.msk [vmem:[#allocation2 + $0xa0] sm:$0xff] %vm90_vm0, %v85_v21  ;;  %112 = vst.msk [vmem:[#allocation2 + $0xa8] sm:$0xff] %vm90_vm0, %v86_v22  ;;  %v133_v43 = vld [vmem:[%s3855_s7 + $0x88] sm:$0xff]  ;;  %v134_v44 = vld [vmem:[%s3855_s7 + $0x90] sm:$0xff] }
  0x3a   :  { %113 = vst.msk [vmem:[#allocation2 + $0xb0] sm:$0xff] %vm90_vm0, %v87_v23  ;;  %211 = vst.msk [vmem:[#allocation2 + $0x168] sm:$0xff] %vm90_vm0, %v85_v21  ;;  %v135_v45 = vld [vmem:[%s3855_s7 + $0x98] sm:$0xff]  ;;  %v136_v46 = vld [vmem:[%s3855_s7 + $0xa0] sm:$0xff] }
  0x3b   :  { %212 = vst.msk [vmem:[#allocation2 + $0x170] sm:$0xff] %vm90_vm0, %v86_v22  ;;  %213 = vst.msk [vmem:[#allocation2 + $0x178] sm:$0xff] %vm90_vm0, %v87_v23  ;;  %v137_v47 = vld [vmem:[%s3855_s7 + $0xa8] sm:$0xff]  ;;  %v138_v48 = vld [vmem:[%s3855_s7 + $0xb0] sm:$0xff] }
  0x3c   :  { %114 = vst.msk [vmem:[#allocation2 + $0xb8] sm:$0xff] %vm90_vm0, %v88_v24  ;;  %115 = vst.msk [vmem:[#allocation2 + $0xc0] sm:$0xff] %vm90_vm0, %v89_v25  ;;  %v139_v49 = vld [vmem:[%s3855_s7 + $0xb8] sm:$0xff]  ;;  %v140_v50 = vld [vmem:[%s3855_s7 + $0xc0] sm:$0xff] }
  0x3d   :  { %141 = vst.msk [vmem:[#allocation3] sm:$0xff] %vm90_vm0, %v116_v26  ;;  %214 = vst.msk [vmem:[#allocation2 + $0x180] sm:$0xff] %vm90_vm0, %v88_v24 }
  0x3e   :  { %215 = vst.msk [vmem:[#allocation2 + $0x188] sm:$0xff] %vm90_vm0, %v89_v25  ;;  %241 = vst.msk [vmem:[#allocation3 + $0xc8] sm:$0xff] %vm90_vm0, %v116_v26 }
  0x3f   :  { %142 = vst.msk [vmem:[#allocation3 + $0x8] sm:$0xff] %vm90_vm0, %v117_v27  ;;  %143 = vst.msk [vmem:[#allocation3 + $0x10] sm:$0xff] %vm90_vm0, %v118_v28 }
  0x40   :  { %144 = vst.msk [vmem:[#allocation3 + $0x18] sm:$0xff] %vm90_vm0, %v119_v29  ;;  %242 = vst.msk [vmem:[#allocation3 + $0xd0] sm:$0xff] %vm90_vm0, %v117_v27 }
  0x41   :  { %243 = vst.msk [vmem:[#allocation3 + $0xd8] sm:$0xff] %vm90_vm0, %v118_v28  ;;  %244 = vst.msk [vmem:[#allocation3 + $0xe0] sm:$0xff] %vm90_vm0, %v119_v29 }
  0x42   :  { %145 = vst.msk [vmem:[#allocation3 + $0x20] sm:$0xff] %vm90_vm0, %v120_v30  ;;  %146 = vst.msk [vmem:[#allocation3 + $0x28] sm:$0xff] %vm90_vm0, %v121_v31 }
  0x43   :  { %147 = vst.msk [vmem:[#allocation3 + $0x30] sm:$0xff] %vm90_vm0, %v122_v32  ;;  %245 = vst.msk [vmem:[#allocation3 + $0xe8] sm:$0xff] %vm90_vm0, %v120_v30 }
  0x44   :  { %246 = vst.msk [vmem:[#allocation3 + $0xf0] sm:$0xff] %vm90_vm0, %v121_v31  ;;  %247 = vst.msk [vmem:[#allocation3 + $0xf8] sm:$0xff] %vm90_vm0, %v122_v32 }
  0x45   :  { %148 = vst.msk [vmem:[#allocation3 + $0x38] sm:$0xff] %vm90_vm0, %v123_v33  ;;  %149 = vst.msk [vmem:[#allocation3 + $0x40] sm:$0xff] %vm90_vm0, %v124_v34 }
  0x46   :  { %150 = vst.msk [vmem:[#allocation3 + $0x48] sm:$0xff] %vm90_vm0, %v125_v35  ;;  %248 = vst.msk [vmem:[#allocation3 + $0x100] sm:$0xff] %vm90_vm0, %v123_v33 }
  0x47   :  { %249 = vst.msk [vmem:[#allocation3 + $0x108] sm:$0xff] %vm90_vm0, %v124_v34  ;;  %250 = vst.msk [vmem:[#allocation3 + $0x110] sm:$0xff] %vm90_vm0, %v125_v35 }
  0x48   :  { %151 = vst.msk [vmem:[#allocation3 + $0x50] sm:$0xff] %vm90_vm0, %v126_v36  ;;  %152 = vst.msk [vmem:[#allocation3 + $0x58] sm:$0xff] %vm90_vm0, %v127_v37 }
  0x49   :  { %153 = vst.msk [vmem:[#allocation3 + $0x60] sm:$0xff] %vm90_vm0, %v128_v38  ;;  %251 = vst.msk [vmem:[#allocation3 + $0x118] sm:$0xff] %vm90_vm0, %v126_v36 }
  0x4a   :  { %252 = vst.msk [vmem:[#allocation3 + $0x120] sm:$0xff] %vm90_vm0, %v127_v37  ;;  %253 = vst.msk [vmem:[#allocation3 + $0x128] sm:$0xff] %vm90_vm0, %v128_v38 }
  0x4b   :  { %154 = vst.msk [vmem:[#allocation3 + $0x68] sm:$0xff] %vm90_vm0, %v129_v39  ;;  %155 = vst.msk [vmem:[#allocation3 + $0x70] sm:$0xff] %vm90_vm0, %v130_v40 }
  0x4c   :  { %156 = vst.msk [vmem:[#allocation3 + $0x78] sm:$0xff] %vm90_vm0, %v131_v41  ;;  %254 = vst.msk [vmem:[#allocation3 + $0x130] sm:$0xff] %vm90_vm0, %v129_v39 }
  0x4d   :  { %255 = vst.msk [vmem:[#allocation3 + $0x138] sm:$0xff] %vm90_vm0, %v130_v40  ;;  %256 = vst.msk [vmem:[#allocation3 + $0x140] sm:$0xff] %vm90_vm0, %v131_v41 }
  0x4e   :  { %157 = vst.msk [vmem:[#allocation3 + $0x80] sm:$0xff] %vm90_vm0, %v132_v42  ;;  %158 = vst.msk [vmem:[#allocation3 + $0x88] sm:$0xff] %vm90_vm0, %v133_v43 }
  0x4f   :  { %159 = vst.msk [vmem:[#allocation3 + $0x90] sm:$0xff] %vm90_vm0, %v134_v44  ;;  %257 = vst.msk [vmem:[#allocation3 + $0x148] sm:$0xff] %vm90_vm0, %v132_v42 }
  0x50   :  { %258 = vst.msk [vmem:[#allocation3 + $0x150] sm:$0xff] %vm90_vm0, %v133_v43  ;;  %259 = vst.msk [vmem:[#allocation3 + $0x158] sm:$0xff] %vm90_vm0, %v134_v44 }
  0x51   :  { %160 = vst.msk [vmem:[#allocation3 + $0x98] sm:$0xff] %vm90_vm0, %v135_v45  ;;  %161 = vst.msk [vmem:[#allocation3 + $0xa0] sm:$0xff] %vm90_vm0, %v136_v46 }
  0x52   :  { %162 = vst.msk [vmem:[#allocation3 + $0xa8] sm:$0xff] %vm90_vm0, %v137_v47  ;;  %260 = vst.msk [vmem:[#allocation3 + $0x160] sm:$0xff] %vm90_vm0, %v135_v45 }
  0x53   :  { %261 = vst.msk [vmem:[#allocation3 + $0x168] sm:$0xff] %vm90_vm0, %v136_v46  ;;  %262 = vst.msk [vmem:[#allocation3 + $0x170] sm:$0xff] %vm90_vm0, %v137_v47 }
  0x54   :  { %163 = vst.msk [vmem:[#allocation3 + $0xb0] sm:$0xff] %vm90_vm0, %v138_v48  ;;  %164 = vst.msk [vmem:[#allocation3 + $0xb8] sm:$0xff] %vm90_vm0, %v139_v49 }
  0x55   :  { %165 = vst.msk [vmem:[#allocation3 + $0xc0] sm:$0xff] %vm90_vm0, %v140_v50  ;;  %263 = vst.msk [vmem:[#allocation3 + $0x178] sm:$0xff] %vm90_vm0, %v138_v48 }
  0x56   :  { %264 = vst.msk [vmem:[#allocation3 + $0x180] sm:$0xff] %vm90_vm0, %v139_v49  ;;  %265 = vst.msk [vmem:[#allocation3 + $0x188] sm:$0xff] %vm90_vm0, %v140_v50 }
  0x57 LB: > { %s272_s7 = scalar_lea.smem [#allocation4], %s2670_s2  ;;  %s2694_s3 = smov 0   ;;  %s2670_s2 = sphi %s2668_s2, %s271_s2  }
  0x58   : > { %273 = sst [smem:[%s272_s7]] %s2694_s3  ;;  %s271_s2 = sadd.s32 1, %s2670_s2  }
  0x59   : > { %p268_p10 = scmp.ge.s32.totalorder %s271_s2, 40  }
  0x5a   :  { %s2672_s20 = smov (%p268_p10), 0  }
  0x5b   :  { %270 = sbr.rel (!%p268_p10) target bundleno = 87 (0x57), region = 153 }
  0x60 LB: > { %s280_s21 = scalar_lea.smem [#allocation5], %s2674_s20  ;;  %s2695_s22 = smov 0   ;;  %s2674_s20 = sphi %s2672_s20, %s279_s20  }
  0x61   : > { %281 = sst [smem:[%s280_s21]] %s2695_s22  ;;  %s279_s20 = sadd.s32 1, %s2674_s20  }
  0x62   : > { %p276_p11 = scmp.ge.s32.totalorder %s279_s20, 20  }
  0x63   :  { %v282_v51 = vlaneseq (%p276_p11)  ;;  %v3069_v52 = vld [vmem:[%s3857_s9] ss:$0 sm:$0xff] (%p276_p11)  ;;  %v3092_v59 = vmov (%p276_p11), 0.0   ;;  %v3094_v60 = vmov (%p276_p11), 0.0   ;;  %s3098_s9 = smov (%p276_p11), 0  }
  0x64   :  { %278 = sbr.rel (!%p276_p11) target bundleno = 96 (0x60), region = 164  ;;  %v3074_v53 = vld [vmem:[%s3859_s11] ss:$0 sm:$0xff] (%p276_p11) }
  0x65   :  { %v3076_v54 = vld [vmem:[#allocation9] ss:$0 sm:$0xff] (%p276_p11)  ;;  %v3087_v57 = vand.u32 (%p276_p11), 127, %v282_v51 }
  0x66   :  { %v3081_v55 = vld [vmem:[%s3863_s16] ss:$0 sm:$0xff] (%p276_p11) }
  0x67   :  { %v2120_v56 = vld [vmem:[%s3853_s5] ss:$0 sm:$0xff] (%p276_p11)   ;;  %v3090_v58 = vadd.s32 (%p276_p11), 128, %v3087_v57 }
  0x69 LB: > { %v3115_v61 = vld [vmem:[%s3856_s8 + $0x48] sm:$0xff]  ;;  %v2696_v62 = vmov 0.0   ;;  %v3121_v63 = vld [vmem:[%s3856_s8 + $0x40] sm:$0xff]  ;;  %s3125_s6 = sshll.u32 %s2690_s9, 1  ;;  %v3136_v0 = vld [vmem:[%s3856_s8 + $0x38] sm:$0xff]  ;;  %vm2697_vm1 = vmmov 0   ;;  %s2690_s9 = sphi %s3098_s9, %s325_s9   ;;  %v2686_v56 = vphi %v2120_v56, %v3894_v56   ;;  %v2682_v60 = vphi %v3094_v60, %v3893_v60   ;;  %v2678_v59 = vphi %v3092_v59, %v3892_v59  }
  0x6a   : > { %2276 = vmatprep.subr.mxu0 %v2696_v62  ;;  %2299 = vmatprep.subr.mxu1 %v2696_v62  ;;  %s3129_s18 = sld [smem:[#allocation7 + %s3125_s6]]  ;;  %s331_s19 = sadd.s32 199, %s3125_s6  ;;  %v3148_v1 = vld [vmem:[%s3856_s8 + $0x30] sm:$0xff]  ;;  %v3157_v2 = vld [vmem:[%s3856_s8 + $0x28] sm:$0xff]  ;;  %v3167_v3 = vld [vmem:[%s3856_s8 + $0x20] sm:$0xff]  ;;  %vm349_vm2 = vcmask 1040384  }
  0x6b   : > { %2277 = vmatpush3.msra.mxu0 %v3115_v61  ;;  %s3138_s15 = sld [smem:[#allocation7 + %s331_s19]]  ;;  %v3177_v4 = vld [vmem:[%s3856_s8 + $0x18] sm:$0xff]  ;;  %v3190_v5 = vld [vmem:[%s3856_s8 + $0x10] sm:$0xff]  ;;  %v3199_v6 = vld [vmem:[%s3856_s8 + $0x8] sm:$0xff]  ;;  %2296 = vmatprep.mubr.msk.f32.mxu0 %vm2697_vm1, %v2696_v62  ;;  %s3874_s24 = smov 16   ;;  %vm402_vm3 = vcmask 261120  }
  0x6c   : > { %2278 = vmatprep.subr.mxu0 %v2696_v62  ;;  %s3142_s2 = sld [smem:[#allocation8 + %s3125_s6]]  ;;  %v3213_v7 = vld [vmem:[%s3856_s8] sm:$0xff]  ;;  %2315 = vmatprep.mubr.msk.f32.mxu1 %vm2697_vm1, %v2696_v62  ;;  %s3872_s25 = smov 48   ;;  %vm404_vm4 = vcmask 392192   ;;  %vm406_vm5 = vcmask 523264   ;;  %vm418_vm6 = vcmask 654336  }
  0x6d   : > { %2279 = vmatpush3.msra.mxu0 %v3121_v63  ;;  %s3150_s20 = sld [smem:[#allocation8 + %s331_s19]]  ;;  %v3261_v38 = vld [vmem:[%s3858_s10 + $0x38] sm:$0xff]  ;;  %v3266_v39 = vld [vmem:[%s3858_s10 + $0x30] sm:$0xff]  ;;  %v3273_v40 = vld [vmem:[%s3858_s10 + $0x28] sm:$0xff]  ;;  %vm867_vm7 = vcmask 122880   ;;  %vm877_vm8 = vcmask 123905  }
  0x6e   : > { %2280 = vmatprep.subr.mxu0 %v2696_v62  ;;  %2300 = vmatpush3.msra.mxu1 %v3261_v38  ;;  %v3280_v41 = vld [vmem:[%s3858_s10 + $0x20] sm:$0xff]  ;;  %v3288_v42 = vld [vmem:[%s3858_s10 + $0x18] sm:$0xff]  ;;  %v525_v44 = vld [vmem:[%s3858_s10 + $0x10] sm:$0xff]  ;;  %s3883_s16 = sld [smem:[#allocation17_spill]]  ;;  %s3519_s17 = scalar_lea.vmem [#allocation2], %s3125_s6 }
  0x6f   : > { %2281 = vmatpush3.msra.mxu0 %v3136_v0  ;;  %2301 = vmatprep.subr.mxu1 %v2696_v62  ;;  %v524_v46 = vld [vmem:[%s3858_s10 + $0x8] sm:$0xff]  ;;  %v523_v48 = vld [vmem:[%s3858_s10] sm:$0xff] }
  0x70   : > { %2282 = vmatprep.subr.mxu0 %v2696_v62  ;;  %s3161_s23 = sld [smem:[#allocation4 + %s3129_s18]]  ;;  %2302 = vmatpush3.msra.mxu1 %v3266_v39 }
  0x71   : > { %2283 = vmatpush3.msra.mxu0 %v3148_v1  ;;  %s336_s26 = sadd.s32 20, %s3138_s15  ;;  %2303 = vmatprep.subr.mxu1 %v2696_v62 }
  0x72   : > { %2284 = vmatprep.subr.mxu0 %v2696_v62  ;;  %s3171_s27 = sld [smem:[#allocation4 + %s336_s26]]  ;;  %s3870_s26 = smov 32   ;;  %2304 = vmatpush3.msra.mxu1 %v3273_v40 }
  0x73   : > { %2285 = vmatpush3.msra.mxu0 %v3157_v2  ;;  %s3180_s0 = sld [smem:[#allocation5 + %s3142_s2]]  ;;  %s339_s5 = sadd.s32 10, %s3150_s20  ;;  %2305 = vmatprep.subr.mxu1 %v2696_v62 }
  0x74   : > { %2286 = vmatprep.subr.mxu0 %v2696_v62  ;;  %s3184_s11 = sld [smem:[#allocation5 + %s339_s5]]  ;;  %2306 = vmatpush3.msra.mxu1 %v3280_v41 }
  0x75   : > { %2287 = vmatpush3.msra.mxu0 %v3167_v3  ;;  %2307 = vmatprep.subr.mxu1 %v2696_v62 }
  0x76   : > { %2288 = vmatprep.subr.mxu0 %v2696_v62  ;;  %s351_s19 = ssub.s32 %s3125_s6, %s3161_s23  ;;  %s341_s28 = scalar_lea.vmem [#allocation2], %s3161_s23  ;;  %2308 = vmatpush3.msra.mxu1 %v3288_v42 }
  0x77   : > { %2289 = vmatpush3.msra.mxu0 %v3177_v4  ;;  %s352_s21 = scalar_lea.vmem %s3852_s4, %s351_s19  ;;  %v342_v22 = vld [vmem:[%s341_s28] sm:$0x1]  ;;  %2309 = vmatprep.subr.mxu1 %v2696_v62  ;;  %s3459_s23 = sadd.s32 1, %s3125_s6 }
  0x78   : > { %2290 = vmatprep.subr.mxu0 %v2696_v62  ;;  %s354_s22 = ssub.s32 %s3125_s6, %s3171_s27  ;;  %v353_v8 = vld [vmem:[%s352_s21] sm:$0x1]  ;;  %2310 = vmatpush3.msra.mxu1 %v525_v44 }
  0x79   : > { %2291 = vmatpush3.msra.mxu0 %v3190_v5  ;;  %s355_s29 = scalar_lea.vmem %s3852_s4, %s354_s22  ;;  %s370_s5 = ssub.s32 %s3125_s6, %s3180_s0  ;;  %2311 = vmatprep.subr.mxu1 %v2696_v62 }
  0x7a   : > { %2292 = vmatprep.subr.mxu0 %v2696_v62  ;;  %v356_v9 = vld [vmem:[%s355_s29] sm:$0x1]  ;;  %s371_s19 = scalar_lea.vmem %s3852_s4, %s370_s5  ;;  %s373_s1 = ssub.s32 %s3125_s6, %s3184_s11  ;;  %2312 = vmatpush3.msra.mxu1 %v524_v46 }
  0x7b   : > { %2293 = vmatpush3.msra.mxu0 %v3199_v6  ;;  %v358_v10 = vrot.slane %v356_v9, 7  ;;  %s374_s3 = scalar_lea.vmem %s3852_s4, %s373_s1  ;;  %v372_v11 = vld [vmem:[%s371_s19] sm:$0x1]  ;;  %s361_s21 = scalar_lea.vmem [#allocation3], %s3180_s0  ;;  %2313 = vmatprep.subr.mxu1 %v2696_v62 }
  0x7c   : > { %2294 = vmatprep.subr.mxu0 %v2696_v62  ;;  %v375_v12 = vld [vmem:[%s374_s3] sm:$0x1]  ;;  %s2016_s22 = scalar_lea.vmem [#allocation3], %s3184_s11  ;;  %s3869_s0 = smov 64   ;;  %2314 = vmatpush3.msra.mxu1 %v523_v48 }
  0x7d   : > { %2295 = vmatpush3.msra.mxu0 %v3213_v7  ;;  %v360_v13 = vsel %vm349_vm2, %v353_v8, %v358_v10  ;;  %v377_v14 = vrot.slane %v375_v12, 7  ;;  %v362_v15 = vld [vmem:[%s361_s21] sm:$0x1]  ;;  %v2123_v16 = vld [vmem:[%s2016_s22 + $0xc8] sm:$0x1]  ;;  %s2011_s11 = scalar_lea.vmem [#allocation2], %s3171_s27  ;;  %2332 = vmatprep.subr.mxu1 %v2696_v62 }
  0x7e   : > { %2318 = vmatprep.subr.mxu0 %v2696_v62  ;;  %386 = vrot.lane.b32.xlu0 %v360_v13, %s3874_s24  ;;  %v367_v17 = vrot.slane %v2123_v16, 7  ;;  %v2122_v20 = vld [vmem:[%s2011_s11 + $0xc8] sm:$0x1]  ;;  %s2174_s3 = sshll.u32 %s2690_s9, 2  ;;  %s2702_s21 = smov 96  }
  0x7f   : > { %v379_v18 = vsel %vm349_vm2, %v372_v11, %v377_v14  ;;  %v347_v21 = vrot.slane %v2122_v20, 7  ;;  %s2703_s22 = smov 112   ;;  %s3882_s29 = sld [smem:[#allocation15_spill]]  ;;  %v3372_v20 = vld [vmem:[%s3861_s14] sm:$0xff] }
  0x80   : > { %394 = vrot.lane.b32.xlu1 %v379_v18, %s3872_s25  ;;  %v3241_v19 = vsel %vm349_vm2, %v362_v15, %v367_v17  ;;  %v3335_v15 = vld [vmem:[%s3861_s14 + $0x28] sm:$0xff]  ;;  %v3351_v17 = vld [vmem:[%s3861_s14 + $0x18] sm:$0xff]  ;;  %v3358_v18 = vld [vmem:[%s3861_s14 + $0x10] sm:$0xff]  ;;  %s3884_s1 = sld [smem:[#allocation16_spill]]  ;;  %s325_s9 = sadd.s32 1, %s2690_s9  }
  0x81   : > { %v350_v24 = vsel %vm349_vm2, %v342_v22, %v347_v21  ;;  %v3397_v21 = vld [vmem:[%s3860_s12 + $0x8] sm:$0xff]  ;;  %v3403_v22 = vld [vmem:[%s3860_s12] sm:$0xff]  ;;  %s886_s27 = sld [smem:[#allocation7 + %s3459_s23]]  ;;  %p322_p12 = scmp.ge.s32.totalorder %s325_s9, 99  }
  0x82   : > { %390 = vrot.lane.b32.xlu0 %v3241_v19, %s3870_s26  ;;  %s3640_s9 = sld [smem:[#allocation8 + $0x18d]] (%p322_p12)  ;;  %vm2707_vm13 = vmmov (%p322_p12), 0   ;;  %vm1788_vm14 = vcmp.eq.s32.totalorder (%p322_p12), %v3090_v58, 198  ;;  %vm1990_vm15 = vcmask (%p322_p12), 1041408  }
  0x84   : > { %398 = vrot.lane.b32.xlu1 %v2686_v56, %s3869_s0 }
  0x85   : > { %s3305_s5 = scalar_lea.vmem %s3882_s29, %s2174_s3  ;;  %s871_s29 = scalar_lea.smem [#allocation4], %s3129_s18 }
  0x86   : > { %v382_v47 = vld [vmem:[%s3305_s5] sm:$0x3]  ;;  %s3419_s13 = scalar_lea.vmem %s3884_s1, %s2174_s3  ;;  %s875_s3 = sadd.s32 200, %s3125_s6 }
  0x87   : > { %s887_s28 = sld [smem:[#allocation7 + %s875_s3]] }
  0x88   : > { %872 = sst [smem:[%s871_s29]] %s3125_s6 }
  0x89   : > { %s889_s18 = sld [smem:[#allocation8 + %s875_s3]] }
  0x8d   : > { %s891_s19 = sadd.s32 20, %s887_s28  ;;  %s2072_s7 = scalar_lea.smem [#allocation4], %s887_s28 }
  0x8e   : > { %s2073_s11 = scalar_lea.smem %s2072_s7, 20 [#allocation4] }
  0xf0   : > { %v387_v23 = vpop.permute.xlu0 %386 }
  0xf1   : > { %v401_v26 = vsel %vm90_vm0, %v350_v24, %v387_v23 }
  0xf2   : > { %v395_v25 = vpop.permute.xlu1 %394 }
  0xf4   : > { %v391_v27 = vpop.permute.xlu0 %390 }
  0xf5   : > { %v403_v28 = vsel %vm402_vm3, %v401_v26, %v391_v27  ;;  %v3412_v27 = vld [vmem:[%s3883_s16 + $0x8] sm:$0xff] }
  0xf6   : > { %v405_v29 = vsel %vm404_vm4, %v403_v28, %v395_v25  ;;  %v399_v30 = vpop.permute.xlu1 %398  ;;  %v3425_v28 = vld [vmem:[%s3883_s16] sm:$0xff]  ;;  %s2036_s16 = scalar_lea.smem [#allocation4], %s3138_s15  ;;  %s3476_s15 = sld [smem:[#allocation8 + %s3459_s23]] }
  0xf7   : > { %v407_v31 = vsel %vm406_vm5, %v405_v29, %v399_v30  ;;  %v384_v29 = vld [vmem:[%s3419_s13] sm:$0x3]  ;;  %s2037_s30 = scalar_lea.smem %s2036_s16, 20 [#allocation4]  ;;  %s894_s16 = sadd.s32 10, %s889_s18 }
  0xf8   : > { %2297 = vmatmul.mubr.msk.f32.vlgmr.msra.gmra.mxu0 %vm418_vm6, %v407_v31  ;;  %882 = sst [smem:[%s2037_s30]] %s3125_s6 }
  0xf9   : > { %2322 = vmatprep.mubr.msk.f32.mxu0 %vm2697_vm1, %v2696_v62  ;;  %2319 = vmatpush3.msra.mxu0 %v3397_v21  ;;  %s3466_s1 = sld [smem:[#allocation4 + %s891_s19]] }
  0xfa   : > { %2320 = vmatprep.subr.mxu0 %v2696_v62  ;;  %s3468_s0 = sld [smem:[#allocation4 + %s886_s27]] }
  0xfb   : > { %2321 = vmatpush3.msra.mxu0 %v3403_v22 }
  0xfc   : > { %2325 = vmatprep.subr.mxu0 %v2696_v62 }
  0xff   : > { %s908_s28 = ssub.s32 %s3459_s23, %s3466_s1 }
 0x100   : > { %s909_s3 = scalar_lea.vmem %s3852_s4, %s908_s28  ;;  %s896_s30 = scalar_lea.vmem [#allocation2], %s3468_s0 }
 0x1b8   : > { %v488_v32 = vpop.f32.mrf.mxu0 }
 0x1b9   : > { %v489_v33 = vadd.f32 %v3069_v52, %v488_v32 }
 0x1ba   : > { %v2298_v34 = vpop.f32.mrf.mxu0 }
 0x1bb   : > { %v2126_v35 = vmul.f32 -1.442695, %v489_v33 }
 0x1bd   : > { %2564 = vpow2.f32 %v2126_v35 }
 0x1ca   : > { %v2565_v36 = vpop.eup %2564 }
 0x1cb   : > { %v495_v37 = vadd.f32 1.0, %v2565_v36 }
 0x1cd   : > { %2566 = vrcp.f32 %v495_v37 }
 0x1da   : > { %v2567_v43 = vpop.eup %2566 }
 0x1db   : > { %504 = vrot.lane.b32.xlu1 %v2567_v43, %s2702_s21  ;;  %500 = vrot.lane.b32.xlu0 %v2567_v43, %s2703_s22  ;;  %v3298_v45 = vmul.f32 %v2567_v43, %v350_v24 }
 0x1df   : > { %509 = vrot.lane.b32.xlu0 %v3298_v45, %s3874_s24 }
 0x1e3   : > { %519 = vrot.lane.b32.xlu0 %v382_v47, %s3872_s25 }
 0x24d   : > { %v501_v49 = vpop.permute.xlu0 %500  ;;  %v505_v8 = vpop.permute.xlu1 %504 }
 0x24e   : > { %v3322_v50 = vmul.f32 %v501_v49, %v3241_v19  ;;  %v3327_v10 = vmul.f32 %v2686_v56, %v505_v8  ;;  %v3342_v56 = vld [vmem:[%s3861_s14 + $0x20] sm:$0xff]  ;;  %v3365_v19 = vld [vmem:[%s3861_s14 + $0x8] sm:$0xff] }
 0x250   : > { %513 = vrot.lane.b32.xlu1 %v3322_v50, %s3870_s26  ;;  %s1420_s26 = scalar_lea.smem [#allocation4], %s886_s27  ;;  %s873_s27 = scalar_lea.smem [#allocation5], %s3142_s2 }
 0x251   : > { %v510_v9 = vpop.permute.xlu0 %509  ;;  %1421 = sst [smem:[%s1420_s26]] %s3459_s23  ;;  %s2038_s26 = scalar_lea.smem [#allocation5], %s3150_s20 }
 0x252   : > { %v516_v12 = vsel %vm90_vm0, %v3327_v10, %v510_v9  ;;  %1430 = sst [smem:[%s2073_s11]] %s3459_s23  ;;  %s2039_s29 = scalar_lea.smem %s2038_s26, 10 [#allocation5] }
 0x253   : > { %874 = sst [smem:[%s873_s27]] %s3125_s6  ;;  %s905_s11 = ssub.s32 %s3459_s23, %s3468_s0 }
 0x254   : > { %884 = sst [smem:[%s2039_s29]] %s3125_s6  ;;  %s906_s27 = scalar_lea.vmem %s3852_s4, %s905_s11 }
 0x255   : > { %v520_v11 = vpop.permute.xlu0 %519  ;;  %s3488_s7 = sld [smem:[#allocation5 + %s3476_s15]]  ;;  %s2074_s26 = scalar_lea.smem [#allocation5], %s889_s18 }
 0x256   : > { %s3492_s25 = sld [smem:[#allocation5 + %s894_s16]]  ;;  %s2075_s29 = scalar_lea.smem %s2074_s26, 10 [#allocation5] }
 0x257   : > { %s1422_s18 = scalar_lea.smem [#allocation5], %s3476_s15  ;;  %s3885_s2 = smov 16  }
 0x258   : > { %1423 = sst [smem:[%s1422_s18]] %s3459_s23  ;;  %s3886_s20 = smov 48  }
 0x259   : > { %1432 = sst [smem:[%s2075_s29]] %s3459_s23  ;;  %s3887_s26 = smov 32  }
 0x25a   : > { %s3888_s29 = smov 64  }
 0x25b   : > { %s924_s28 = ssub.s32 %s3459_s23, %s3488_s7 }
 0x25c   : > { %s925_s24 = scalar_lea.vmem %s3852_s4, %s924_s28  ;;  %s927_s16 = ssub.s32 %s3459_s23, %s3492_s25 }
 0x25d   : > { %s928_s11 = scalar_lea.vmem %s3852_s4, %s927_s16  ;;  %v926_v34 = vld [vmem:[%s925_s24] sm:$0x1]  ;;  %s3526_s24 = scalar_lea.vmem [#allocation3], %s3125_s6 }
 0x25e   : > { %v929_v33 = vld [vmem:[%s928_s11] sm:$0x1]  ;;  %s2046_s15 = scalar_lea.vmem [#allocation3], %s3492_s25  ;;  %s2041_s28 = scalar_lea.vmem [#allocation2], %s3466_s1 }
 0x25f   : > { %v931_v35 = vrot.slane %v929_v33, 7 }
 0x261   : > { %v933_v36 = vsel %vm349_vm2, %v926_v34, %v931_v35 }
 0x2c2   : > { %v514_v13 = vpop.permute.xlu1 %513 }
 0x2c3   : > { %v517_v14 = vsel %vm402_vm3, %v516_v12, %v514_v13 }
 0x2c4   : > { %v522_v16 = vsel %vm404_vm4, %v517_v14, %v520_v11 }
 0x2c5   : > { %2316 = vmatmul.mubr.msk.f32.vlgmr.msra.gmra.mxu1 %vm406_vm5, %v522_v16 }
 0x2c6   : > { %2333 = vmatpush3.msra.mxu1 %v3335_v15  ;;  %2344 = vmatprep.mubr.msk.f32.mxu1 %vm2697_vm1, %v2696_v62 }
 0x2c7   : > { %2334 = vmatprep.subr.mxu1 %v2696_v62 }
 0x2c8   : > { %2335 = vmatpush3.msra.mxu1 %v3342_v56 }
 0x2c9   : > { %2336 = vmatprep.subr.mxu1 %v2696_v62 }
 0x2ca   : > { %2337 = vmatpush3.msra.mxu1 %v3351_v17 }
 0x2cb   : > { %2338 = vmatprep.subr.mxu1 %v2696_v62 }
 0x2cc   : > { %2339 = vmatpush3.msra.mxu1 %v3358_v18 }
 0x2cd   : > { %2340 = vmatprep.subr.mxu1 %v2696_v62 }
 0x2ce   : > { %2341 = vmatpush3.msra.mxu1 %v3365_v19 }
 0x2cf   : > { %2342 = vmatprep.subr.mxu1 %v2696_v62 }
 0x2d0   : > { %2343 = vmatpush3.msra.mxu1 %v3372_v20 }
 0x2d1   : > { %2345 = vmatmul.mubr.msk.f32.vlgmr.msra.gmra.mxu1 %vm404_vm4, %v517_v14  ;;  %2370 = vmatprep.subr.mxu1 %v2696_v62 }
 0x2d2   : > { %2371 = vmatpush3.msra.mxu1 %v3261_v38  ;;  %2386 = vmatprep.mubr.msk.f32.mxu1 %vm2697_vm1, %v2696_v62 }
 0x2d3   : > { %2372 = vmatprep.subr.mxu1 %v2696_v62 }
 0x2d4   : > { %2373 = vmatpush3.msra.mxu1 %v3266_v39 }
 0x2d5   : > { %2374 = vmatprep.subr.mxu1 %v2696_v62 }
 0x2d6   : > { %2375 = vmatpush3.msra.mxu1 %v3273_v40 }
 0x2d7   : > { %2376 = vmatprep.subr.mxu1 %v2696_v62 }
 0x2d8   : > { %2377 = vmatpush3.msra.mxu1 %v3280_v41 }
 0x2d9   : > { %2378 = vmatprep.subr.mxu1 %v2696_v62 }
 0x2da   : > { %2379 = vmatpush3.msra.mxu1 %v3288_v42 }
 0x2db   : > { %2380 = vmatprep.subr.mxu1 %v2696_v62 }
 0x2dc   : > { %2381 = vmatpush3.msra.mxu1 %v525_v44 }
 0x2dd   : > { %2382 = vmatprep.subr.mxu1 %v2696_v62 }
 0x2de   : > { %2383 = vmatpush3.msra.mxu1 %v524_v46 }
 0x2df   : > { %2384 = vmatprep.subr.mxu1 %v2696_v62 }
 0x2e0   : > { %2385 = vmatpush3.msra.mxu1 %v523_v48 }
 0x2e1   : > { %2403 = vmatprep.subr.mxu1 %v2696_v62 }
 0x385   : > { %v600_v23 = vpop.f32.mrf.mxu1 }
 0x386   : > { %v601_v24 = vadd.f32 %v3074_v53, %v600_v23 }
 0x387   : > { %v2317_v25 = vpop.f32.mrf.mxu1 }
 0x388   : > { %v604_v26 = vmax.f32 %v601_v24, 0.0 }
 0x38a   : > { %2323 = vmatmul.mubr.msk.f32.vlgmr.msra.gmra.mxu0 %vm90_vm0, %v604_v26 }
 0x38b   : > { %2326 = vmatpush3.msra.mxu0 %v3412_v27  ;;  %2329 = vmatprep.mubr.msk.f32.mxu0 %vm2697_vm1, %v2696_v62 }
 0x38c   : > { %2327 = vmatprep.subr.mxu0 %v2696_v62 }
 0x38d   : > { %2328 = vmatpush3.msra.mxu0 %v3425_v28 }
 0x38e   : > { %2330 = vmatmul.mubr.msk.f32.vlgmr.msra.gmra.mxu0 %vm90_vm0, %v384_v29  ;;  %2347 = vmatprep.subr.mxu0 %v2696_v62 }
 0x38f   : > { %2348 = vmatpush3.msra.mxu0 %v3115_v61  ;;  %2367 = vmatprep.mubr.msk.f32.mxu0 %vm2697_vm1, %v2696_v62 }
 0x390   : > { %2349 = vmatprep.subr.mxu0 %v2696_v62 }
 0x391   : > { %v850_v30 = vpop.f32.mrf.mxu1  ;;  %2350 = vmatpush3.msra.mxu0 %v3121_v63 }
 0x392   : > { %2351 = vmatprep.subr.mxu0 %v2696_v62 }
 0x393   : > { %v2346_v31 = vpop.f32.mrf.mxu1  ;;  %2352 = vmatpush3.msra.mxu0 %v3136_v0 }
 0x394   : > { %2353 = vmatprep.subr.mxu0 %v2696_v62  ;;  %v2140_v31 = vld [vmem:[%s3305_s5 + $0x2] sm:$0x3] }
 0x395   : > { %2354 = vmatpush3.msra.mxu0 %v3148_v1 }
 0x396   : > { %2355 = vmatprep.subr.mxu0 %v2696_v62 }
 0x397   : > { %2356 = vmatpush3.msra.mxu0 %v3157_v2 }
 0x398   : > { %2357 = vmatprep.subr.mxu0 %v2696_v62 }
 0x399   : > { %2358 = vmatpush3.msra.mxu0 %v3167_v3 }
 0x39a   : > { %2359 = vmatprep.subr.mxu0 %v2696_v62 }
 0x39b   : > { %2360 = vmatpush3.msra.mxu0 %v3177_v4  ;;  %v910_v4 = vld [vmem:[%s909_s3] sm:$0x1] }
 0x39c   : > { %2361 = vmatprep.subr.mxu0 %v2696_v62 }
 0x39d   : > { %2362 = vmatpush3.msra.mxu0 %v3190_v5  ;;  %v912_v5 = vrot.slane %v910_v4, 7 }
 0x39e   : > { %2363 = vmatprep.subr.mxu0 %v2696_v62 }
 0x39f   : > { %2364 = vmatpush3.msra.mxu0 %v3199_v6  ;;  %v907_v6 = vld [vmem:[%s906_s27] sm:$0x1]  ;;  %s915_s27 = scalar_lea.vmem [#allocation3], %s3488_s7 }
 0x3a0   : > { %2365 = vmatprep.subr.mxu0 %v2696_v62  ;;  %v914_v32 = vsel %vm349_vm2, %v907_v6, %v912_v5 }
 0x3a1   : > { %2366 = vmatpush3.msra.mxu0 %v3213_v7 }
 0x3a2   : > { %2389 = vmatprep.subr.mxu0 %v2696_v62 }
 0x44a   : > { %v3472_v61 = vpop.f32.mrf.mxu0 }
 0x44c   : > { %v2324_v63 = vpop.f32.mrf.mxu0 }
 0x44d   : > { %v677_v63 = vadd.f32 %v3076_v54, %v3472_v61 }
 0x44e   : > { %v777_v0 = vpop.f32.mrf.mxu0 }
 0x44f   : > { %v851_v1 = vadd.f32 %v850_v30, %v777_v0  ;;  %v2129_v0 = vmul.f32 -1.442695, %v677_v63 }
 0x450   : > { %v2331_v2 = vpop.f32.mrf.mxu0 }
 0x451   : > { %v854_v3 = vadd.f32 %v3081_v55, %v851_v1 }
 0x453   : > { %2568 = vtanh.f32 %v854_v3 }
 0x460   : > { %v2569_v7 = vpop.eup %2568 }
 0x461   : > { %858 = vrot.lane.b32.xlu0 %v2569_v7, %s2703_s22  ;;  %862 = vrot.lane.b32.xlu1 %v2569_v7, %s2702_s21 }
 0x465   : > { %940 = vrot.lane.b32.xlu1 %v914_v32, %s3885_s2 }
 0x469   : > { %948 = vrot.lane.b32.xlu1 %v933_v36, %s3886_s20 }
 0x4d3   : > { %v859_v37 = vpop.permute.xlu0 %858  ;;  %v863_v38 = vpop.permute.xlu1 %862 }
 0x4d4   : > { %v861_v39 = vadd.f32 %v859_v37, %v3298_v45  ;;  %v865_v40 = vadd.f32 %v863_v38, %v3322_v50  ;;  %v856_v45 = vadd.f32 %v2569_v7, %v3327_v10 }
 0x4d6   : > { %868 = vst.msk [vmem:[%s3519_s17] sm:$0x1] %vm867_vm7, %v861_v39  ;;  %870 = vst.msk [vmem:[%s3526_s24] sm:$0x1] %vm867_vm7, %v865_v40 }
 0x4d7   : > { %2133 = vst.msk [vmem:[%s3519_s17 + $0xc7] sm:$0x2] %vm877_vm8, %v861_v39  ;;  %2135 = vst.msk [vmem:[%s3526_s24 + $0xc7] sm:$0x2] %vm877_vm8, %v865_v40  ;;  %v941_v50 = vpop.permute.xlu1 %940 }
 0x4db   : > { %v949_v12 = vpop.permute.xlu1 %948 }
 0x4de   : > { %v2137_v41 = vld [vmem:[%s2046_s15 + $0xc8] sm:$0x1]  ;;  %v916_v43 = vld [vmem:[%s915_s27] sm:$0x1]  ;;  %s2706_s15 = smov (%p322_p12), 198   ;;  %s1441_s27 = sadd.s32 (%p322_p12), 10, %s3640_s9 }
 0x4df   : > { %v921_v42 = vrot.slane %v2137_v41, 7  ;;  %v2136_v46 = vld [vmem:[%s2041_s28 + $0xc8] sm:$0x1]  ;;  %v897_v48 = vld [vmem:[%s896_s30] sm:$0x1]  ;;  %s3671_s0 = sld [smem:[#allocation5 + %s1441_s27]] (%p322_p12) }
 0x4e0   : > { %v902_v47 = vrot.slane %v2136_v46, 7 }
 0x4e1   : > { %v923_v44 = vsel %vm349_vm2, %v916_v43, %v921_v42 }
 0x4e2   : > { %944 = vrot.lane.b32.xlu0 %v923_v44, %s3887_s26  ;;  %v904_v49 = vsel %vm349_vm2, %v897_v48, %v902_v47 }
 0x4e3   : > { %v955_v8 = vsel %vm90_vm0, %v904_v49, %v941_v50 }
 0x4e5   :  { %s1475_s25 = ssub.s32 (%p322_p12), 198, %s3671_s0 }
 0x4e6   : > { %952 = vrot.lane.b32.xlu0 %v856_v45, %s3888_s29 }
 0x554   : > { %v945_v9 = vpop.permute.xlu0 %944 }
 0x555   : > { %v956_v11 = vsel %vm402_vm3, %v955_v8, %v945_v9  ;;  %v686_v8 = vstv %s3125_s6  ;;  %v1236_v9 = vstv %s3459_s23  ;;  %s2159_s6 = sld [smem:[#allocation7 + $0xc6]] (%p322_p12) }
 0x556   : > { %v957_v13 = vsel %vm404_vm4, %v956_v11, %v949_v12  ;;  %vm687_vm9 = vcmp.eq.s32.totalorder %v3087_v57, %v686_v8  ;;  %vm688_vm10 = vcmp.eq.s32.totalorder %v3090_v58, %v686_v8  ;;  %vm1237_vm11 = vcmp.eq.s32.totalorder %v3087_v57, %v1236_v9  ;;  %v1516_v57 = vld [vmem:[%s3856_s8 + $0x38] sm:$0xff] (%p322_p12)  ;;  %v1625_v8 = vld [vmem:[%s3858_s10 + $0x8] sm:$0xff] (%p322_p12) }
 0x557   : > { %vm1238_vm12 = vcmp.eq.s32.totalorder %v3090_v58, %v1236_v9 }
 0x558   : > { %v953_v14 = vpop.permute.xlu0 %952 }
 0x559   : > { %v958_v10 = vsel %vm406_vm5, %v957_v13, %v953_v14 }
 0x55a   : > { %2368 = vmatmul.mubr.msk.f32.vlgmr.msra.gmra.mxu0 %vm418_vm6, %v958_v10 }
 0x55b   : > { %2390 = vmatpush3.msra.mxu0 %v3397_v21  ;;  %2393 = vmatprep.mubr.msk.f32.mxu0 %vm2697_vm1, %v2696_v62  ;;  %v2704_v21 = vmov 0   ;;  %s3650_s16 = sld [smem:[#allocation4 + %s2159_s6]] (%p322_p12) }
 0x55c   : > { %2391 = vmatprep.subr.mxu0 %v2696_v62  ;;  %2562 = vset.pattern.permute.xlu0 %v2704_v21 }
 0x55d   : > { %2392 = vmatpush3.msra.mxu0 %v3403_v22  ;;  %2563 = vset.pattern.permute.xlu1 %v2704_v21  ;;  %v1512_v21 = vld [vmem:[%s3856_s8 + $0x18] sm:$0xff] (%p322_p12) }
 0x55e   : > { %2396 = vmatprep.subr.mxu0 %v2696_v62 }
 0x561   :  { %s1443_s7 = scalar_lea.vmem (%p322_p12), [#allocation2], %s3650_s16 }
 0x61a   : > { %v1038_v16 = vpop.f32.mrf.mxu0 }
 0x61b   : > { %v1039_v23 = vadd.f32 %v3069_v52, %v1038_v16 }
 0x61c   : > { %v2369_v24 = vpop.f32.mrf.mxu0 }
 0x61d   : > { %v2145_v25 = vmul.f32 -1.442695, %v1039_v23  ;;  %v1518_v24 = vld [vmem:[%s3856_s8 + $0x48] sm:$0xff] (%p322_p12) }
 0x61f   : > { %2570 = vpow2.f32 %v2145_v25  ;;  %v2705_v25 = vmov (%p322_p12), 0.0  }
 0x62c   : > { %v2571_v26 = vpop.eup %2570 }
 0x62d   : > { %v1045_v29 = vadd.f32 1.0, %v2571_v26  ;;  %v1517_v26 = vld [vmem:[%s3856_s8 + $0x40] sm:$0xff] (%p322_p12) }
 0x62f   : > { %2572 = vrcp.f32 %v1045_v29  ;;  %v1513_v29 = vld [vmem:[%s3856_s8 + $0x20] sm:$0xff] (%p322_p12) }
 0x630   : > { %2574 = vpow2.f32 %v2129_v0 }
 0x63c   : > { %v2573_v30 = vpop.eup %2572 }
 0x63d   : > { %1054 = vrot.lane.b32.xlu0 %v2573_v30, %s2702_s21  ;;  %1050 = vrot.lane.b32.xlu1 %v2573_v30, %s2703_s22  ;;  %v3555_v22 = vmul.f32 %v2573_v30, %v904_v49  ;;  %v2575_v1 = vpop.eup %2574  ;;  %v1511_v30 = vld [vmem:[%s3856_s8 + $0x10] sm:$0xff] (%p322_p12) }
 0x63e   : > { %v683_v2 = vadd.f32 1.0, %v2575_v1  ;;  %v1509_v1 = vld [vmem:[%s3856_s8] sm:$0xff] (%p322_p12) }
 0x640   : > { %2576 = vrcp.f32 %v683_v2 }
 0x641   : > { %1059 = vrot.lane.b32.xlu1 %v3555_v22, %s3885_s2 }
 0x645   : > { %1069 = vrot.lane.b32.xlu1 %v2140_v31, %s3886_s20 }
 0x64d   : > { %v2577_v5 = vpop.eup %2576 }
 0x6af   : > { %v1051_v3 = vpop.permute.xlu1 %1050  ;;  %v1055_v6 = vpop.permute.xlu0 %1054 }
 0x6b0   : > { %v1053_v4 = vmul.f32 %v1051_v3, %v923_v44  ;;  %v1057_v32 = vmul.f32 %v1055_v6, %v856_v45 }
 0x6b2   : > { %1063 = vrot.lane.b32.xlu0 %v1053_v4, %s3887_s26 }
 0x6b3   : > { %v1060_v7 = vpop.permute.xlu1 %1059 }
 0x6b4   : > { %v1066_v34 = vsel %vm90_vm0, %v1057_v32, %v1060_v7 }
 0x6b6   : > { %695 = vperm.xlu0 %2562, %v2577_v5  }
 0x6b7   : > { %v1070_v33 = vpop.permute.xlu1 %1069 }
 0x724   : > { %v1064_v35 = vpop.permute.xlu0 %1063 }
 0x725   : > { %v1067_v61 = vsel %vm402_vm3, %v1066_v34, %v1064_v35 }
 0x726   : > { %v1072_v36 = vsel %vm404_vm4, %v1067_v61, %v1070_v33 }
 0x727   : > { %2387 = vmatmul.mubr.msk.f32.vlgmr.msra.gmra.mxu1 %vm406_vm5, %v1072_v36 }
 0x728   : > { %2404 = vmatpush3.msra.mxu1 %v3335_v15  ;;  %2415 = vmatprep.mubr.msk.f32.mxu1 %vm2697_vm1, %v2696_v62 }
 0x729   : > { %2405 = vmatprep.subr.mxu1 %v2696_v62 }
 0x72a   : > { %2406 = vmatpush3.msra.mxu1 %v3342_v56 }
 0x72b   : > { %2407 = vmatprep.subr.mxu1 %v2696_v62 }
 0x72c   : > { %2408 = vmatpush3.msra.mxu1 %v3351_v17  ;;  %v2143_v17 = vld [vmem:[%s3419_s13 + $0x2] sm:$0x3]  ;;  %s3638_s13 = sld [smem:[#allocation8 + $0xc6]] (%p322_p12) }
 0x72d   : > { %2409 = vmatprep.subr.mxu1 %v2696_v62 }
 0x72e   : > { %2410 = vmatpush3.msra.mxu1 %v3358_v18 }
 0x72f   : > { %2411 = vmatprep.subr.mxu1 %v2696_v62 }
 0x730   : > { %2412 = vmatpush3.msra.mxu1 %v3365_v19 }
 0x731   : > { %2413 = vmatprep.subr.mxu1 %v2696_v62  ;;  %v696_v48 = vpop.permute.xlu0 %695 }
 0x732   : > { %2414 = vmatpush3.msra.mxu1 %v3372_v20  ;;  %v698_v11 = vsel %vm687_vm9, %v696_v48, %v2682_v60  ;;  %v699_v12 = vsel %vm688_vm10, %v696_v48, %v2678_v59  ;;  %s3664_s28 = sld [smem:[#allocation5 + %s3638_s13]] (%p322_p12)  ;;  %s1970_s23 = scalar_lea.smem (%p322_p12), [#allocation5], %s3638_s13 }
 0x733   : > { %2416 = vmatmul.mubr.msk.f32.vlgmr.msra.gmra.mxu1 %vm404_vm4, %v1067_v61  ;;  %2441 = vmatprep.subr.mxu1 (%p322_p12), %v2705_v25  ;;  %1971 = sst [smem:[%s1970_s23]] (%p322_p12), %s2706_s15  ;;  %s2708_s23 = smov (%p322_p12), 16  }
 0x734   :  { %2457 = vmatprep.mubr.msk.f32.mxu1 (%p322_p12), %vm2707_vm13, %v2705_v25 }
 0x7e7   : > { %v1150_v15 = vpop.f32.mrf.mxu1 }
 0x7e8   : > { %v1151_v56 = vadd.f32 %v3074_v53, %v1150_v15 }
 0x7e9   : > { %v2388_v37 = vpop.f32.mrf.mxu1 }
 0x7ea   : > { %v1154_v38 = vmax.f32 %v1151_v56, 0.0 }
 0x7ec   : > { %2394 = vmatmul.mubr.msk.f32.vlgmr.msra.gmra.mxu0 %vm90_vm0, %v1154_v38 }
 0x7ed   : > { %2397 = vmatpush3.msra.mxu0 %v3412_v27  ;;  %2400 = vmatprep.mubr.msk.f32.mxu0 %vm2697_vm1, %v2696_v62 }
 0x7ee   : > { %2398 = vmatprep.subr.mxu0 %v2696_v62 }
 0x7ef   : > { %2399 = vmatpush3.msra.mxu0 %v3425_v28 }
 0x7f0   : > { %2401 = vmatmul.mubr.msk.f32.vlgmr.msra.gmra.mxu0 %vm90_vm0, %v2143_v17  ;;  %2418 = vmatprep.subr.mxu0 (%p322_p12), %v2705_v25 }
 0x7f1   :  { %2419 = vmatpush3.msra.mxu0 (%p322_p12), %v1518_v24  ;;  %2438 = vmatprep.mubr.msk.f32.mxu0 (%p322_p12), %vm2707_vm13, %v2705_v25 }
 0x7f2   :  { %2420 = vmatprep.subr.mxu0 (%p322_p12), %v2705_v25 }
 0x7f3   : > { %v1400_v18 = vpop.f32.mrf.mxu1  ;;  %2421 = vmatpush3.msra.mxu0 (%p322_p12), %v1517_v26 }
 0x7f4   :  { %2422 = vmatprep.subr.mxu0 (%p322_p12), %v2705_v25 }
 0x7f5   : > { %v2417_v19 = vpop.f32.mrf.mxu1  ;;  %2423 = vmatpush3.msra.mxu0 (%p322_p12), %v1516_v57 }
 0x7f6   :  { %2424 = vmatprep.subr.mxu0 (%p322_p12), %v2705_v25 }
 0x8ac   : > { %v1226_v20 = vpop.f32.mrf.mxu0 }
 0x8ad   : > { %v1227_v39 = vadd.f32 %v3076_v54, %v1226_v20 }
 0x8ae   : > { %v2395_v40 = vpop.f32.mrf.mxu0 }
 0x8af   : > { %v2148_v41 = vmul.f32 -1.442695, %v1227_v39 }
 0x8b0   : > { %v1327_v42 = vpop.f32.mrf.mxu0 }
 0x8b1   : > { %2578 = vpow2.f32 %v2148_v41  ;;  %v1401_v27 = vadd.f32 %v1400_v18, %v1327_v42 }
 0x8b2   : > { %v2402_v43 = vpop.f32.mrf.mxu0 }
 0x8b3   : > { %v1404_v44 = vadd.f32 %v3081_v55, %v1401_v27 }
 0x8b5   : > { %2580 = vtanh.f32 %v1404_v44 }
 0x8be   : > { %v2579_v62 = vpop.eup %2578 }
 0x8bf   : > { %v1233_v28 = vadd.f32 1.0, %v2579_v62  ;;  %v1631_v62 = vld [vmem:[%s3858_s10 + $0x38] sm:$0xff] (%p322_p12) }
 0x8c0   :  { %2442 = vmatpush3.msra.mxu1 (%p322_p12), %v1631_v62 }
 0x8c1   : > { %2582 = vrcp.f32 %v1233_v28  ;;  %v1630_v28 = vld [vmem:[%s3858_s10 + $0x30] sm:$0xff] (%p322_p12)  ;;  %2443 = vmatprep.subr.mxu1 (%p322_p12), %v2705_v25 }
 0x8c2   : > { %v2581_v45 = vpop.eup %2580  ;;  %2444 = vmatpush3.msra.mxu1 (%p322_p12), %v1630_v28 }
 0x8c3   : > { %v3593_v56 = vadd.f32 %v2581_v45, %v1057_v32   ;;  %1412 = vrot.lane.b32.xlu0 %v2581_v45, %s2702_s21  ;;  %s2160_s21 = sld [smem:[#allocation7 + $0x18d]] (%p322_p12)  ;;  %2445 = vmatprep.subr.mxu1 (%p322_p12), %v2705_v25 }
 0x8c5   : > { %v3889_v46 = vmov %v3593_v56 }
 0x8c6   : > { %v3894_v56 = vmov %v3889_v46 }
 0x8c9   :  { %s1438_s3 = sadd.s32 (%p322_p12), 20, %s2160_s21  ;;  %s2088_s20 = scalar_lea.smem (%p322_p12), [#allocation4], %s2160_s21 }
 0x8ca   :  { %s3656_s2 = sld [smem:[#allocation4 + %s1438_s3]] (%p322_p12)  ;;  %s2090_s3 = scalar_lea.smem (%p322_p12), [#allocation5], %s3640_s9 }
 0x8cb   :  { %s2091_s11 = scalar_lea.smem (%p322_p12), %s2090_s3, 10 [#allocation5]  ;;  %s1472_s9 = ssub.s32 (%p322_p12), 198, %s3664_s28 }
 0x8cc   :  { %1978 = sst [smem:[%s2091_s11]] (%p322_p12), %s2706_s15  ;;  %s1473_s30 = scalar_lea.vmem (%p322_p12), %s3852_s4, %s1472_s9 }
 0x8cd   :  { %s2712_s9 = smov (%p322_p12), 96   ;;  %s3895_s21 = sld [smem:[#allocation15_spill]] (%p322_p12) }
 0x8ce   : > { %v2583_v47 = vpop.eup %2582 }
 0x8cf   : > { %1245 = vperm.xlu1 %2563, %v2583_v47   ;;  %v1627_v47 = vld [vmem:[%s3858_s10 + $0x18] sm:$0xff] (%p322_p12) }
 0x8d0   :  { %s1456_s19 = ssub.s32 (%p322_p12), 198, %s3656_s2  ;;  %s2077_s1 = scalar_lea.vmem (%p322_p12), [#allocation2], %s3656_s2 }
 0x8d3   : > { %1408 = vrot.lane.b32.xlu1 %v2581_v45, %s2703_s22  ;;  %s1476_s22 = scalar_lea.vmem (%p322_p12), %s3852_s4, %s1475_s25  ;;  %v1628_v45 = vld [vmem:[%s3858_s10 + $0x20] sm:$0xff] (%p322_p12)  ;;  %v2165_v9 = vld [vmem:[%s3895_s21 + $0x18c] sm:$0x3] (%p322_p12) }
 0x8d4   :  { %v1477_v5 = vld [vmem:[%s1476_s22] sm:$0x1] (%p322_p12) }
 0x8d5   :  { %v1479_v7 = vrot.slane (%p322_p12), %v1477_v5, 7 }
 0x935   : > { %v1413_v49 = vpop.permute.xlu0 %1412 }
 0x936   : > { %v1415_v50 = vadd.f32 %v1413_v49, %v1053_v4  ;;  %v1474_v4 = vld [vmem:[%s1473_s30] sm:$0x1] (%p322_p12)  ;;  %v1626_v49 = vld [vmem:[%s3858_s10 + $0x10] sm:$0xff] (%p322_p12)  ;;  %s3897_s30 = sld [smem:[#allocation16_spill]] (%p322_p12) }
 0x937   :  { %v1481_v33 = vsel (%p322_p12), %vm349_vm2, %v1474_v4, %v1479_v7 }
 0x938   : > { %2154 = vst.msk [vmem:[%s3526_s24 + $0x1] sm:$0x1] %vm867_vm7, %v1415_v50 }
 0x939   : > { %2158 = vst.msk [vmem:[%s3526_s24 + $0xc8] sm:$0x2] %vm877_vm8, %v1415_v50  ;;  %s1968_s24 = scalar_lea.smem (%p322_p12), [#allocation4], %s2159_s6  ;;  %s1453_s6 = ssub.s32 (%p322_p12), 198, %s3650_s16 }
 0x93a   :  { %1969 = sst [smem:[%s1968_s24]] (%p322_p12), %s2706_s15  ;;  %s1454_s5 = scalar_lea.vmem (%p322_p12), %s3852_s4, %s1453_s6 }
 0x93b   :  { %v1455_v31 = vld [vmem:[%s1454_s5] sm:$0x1] (%p322_p12)  ;;  %s1463_s5 = scalar_lea.vmem (%p322_p12), [#allocation3], %s3664_s28  ;;  %s2710_s28 = smov (%p322_p12), 32  }
 0x93c   :  { %s3896_s24 = sld [smem:[#allocation17_spill]] (%p322_p12) }
 0x940   :  { %v1464_v3 = vld [vmem:[%s1463_s5] sm:$0x1] (%p322_p12) }
 0x942   :  { %v1806_v7 = vld [vmem:[%s3896_s24] sm:$0xff] (%p322_p12) }
 0x94a   : > { %v1246_v13 = vpop.permute.xlu1 %1245 }
 0x94b   : > { %v3609_v60 = vsel %vm1237_vm11, %v1246_v13, %v698_v11   ;;  %v3611_v59 = vsel %vm1238_vm12, %v1246_v13, %v699_v12   ;;  %v1624_v11 = vld [vmem:[%s3858_s10] sm:$0xff] (%p322_p12) }
 0x94c   : > { %v3890_v14 = vmov %v3609_v60  ;;  %v3891_v10 = vmov %v3611_v59 }
 0x94d   : > { %v3892_v59 = vmov %v3891_v10  ;;  %v3893_v60 = vmov %v3890_v14 }
 0x94e   : > { %v1409_v16 = vpop.permute.xlu1 %1408  ;;  %324 = sbr.rel (!%p322_p12) target bundleno = 105 (0x69), region = 175  ;;  %v1515_v59 = vld [vmem:[%s3856_s8 + $0x30] sm:$0xff] (%p322_p12)  ;;  %v1514_v60 = vld [vmem:[%s3856_s8 + $0x28] sm:$0xff] (%p322_p12) }
 0x94f   : > { %v1411_v23 = vadd.f32 %v1409_v16, %v3555_v22  ;;  %2425 = vmatpush3.msra.mxu0 (%p322_p12), %v1515_v59  ;;  %v1510_v22 = vld [vmem:[%s3856_s8 + $0x8] sm:$0xff] (%p322_p12)  ;;  %s2082_s8 = scalar_lea.vmem (%p322_p12), [#allocation3], %s3671_s0  ;;  %s2711_s0 = smov (%p322_p12), 64  }
 0x950   :  { %2426 = vmatprep.subr.mxu0 (%p322_p12), %v2705_v25  ;;  %v2164_v6 = vld [vmem:[%s2082_s8 + $0xc8] sm:$0x1] (%p322_p12) }
 0x951   : > { %2152 = vst.msk [vmem:[%s3519_s17 + $0x1] sm:$0x1] %vm867_vm7, %v1411_v23  ;;  %2427 = vmatpush3.msra.mxu0 (%p322_p12), %v1514_v60  ;;  %v1469_v32 = vrot.slane (%p322_p12), %v2164_v6, 7  ;;  %v1807_v6 = vld [vmem:[%s3896_s24 + $0x8] sm:$0xff] (%p322_p12) }
 0x952   : > { %2156 = vst.msk [vmem:[%s3519_s17 + $0xc8] sm:$0x2] %vm877_vm8, %v1411_v23  ;;  %s2089_s17 = scalar_lea.smem (%p322_p12), %s2088_s20, 20 [#allocation4]  ;;  %2428 = vmatprep.subr.mxu0 (%p322_p12), %v2705_v25 }
 0x953   :  { %1976 = sst [smem:[%s2089_s17]] %s2706_s15  ;;  %2429 = vmatpush3.msra.mxu0 %v1513_v29  ;;  %s1457_s17 = scalar_lea.vmem %s3852_s4, %s1456_s19  ;;  %v3714_v34 = vsel %vm349_vm2, %v1464_v3, %v1469_v32  ;;  %v1805_v29 = vld [vmem:[%s3861_s14 + $0x28] sm:$0xff] }
 0x954   :  { %2430 = vmatprep.subr.mxu0 %v2705_v25  ;;  %v1458_v63 = vld [vmem:[%s1457_s17] sm:$0x1]  ;;  %s2709_s4 = smov 48   ;;  %s2713_s15 = smov 112  }
 0x955   :  { %2431 = vmatpush3.msra.mxu0 %v1512_v21  ;;  %v1460_v0 = vrot.slane %v1458_v63, 7  ;;  %1495 = vrot.lane.b32.xlu1 %v1481_v33, %s2709_s4  ;;  %v1800_v63 = vld [vmem:[%s3861_s14] sm:$0xff] }
 0x956   :  { %2432 = vmatprep.subr.mxu0 %v2705_v25 }
 0x957   :  { %2433 = vmatpush3.msra.mxu0 %v1511_v30  ;;  %v1462_v2 = vsel %vm349_vm2, %v1455_v31, %v1460_v0  ;;  %v1804_v30 = vld [vmem:[%s3861_s14 + $0x20] sm:$0xff]  ;;  %v1801_v31 = vld [vmem:[%s3861_s14 + $0x8] sm:$0xff] }
 0x958   :  { %2434 = vmatprep.subr.mxu0 %v2705_v25  ;;  %1487 = vrot.lane.b32.xlu0 %v1462_v2, %s2708_s23  ;;  %v1707_v0 = vld [vmem:[%s3860_s12 + $0x8] sm:$0xff] }
 0x959   :  { %2435 = vmatpush3.msra.mxu0 %v1510_v22  ;;  %1499 = vrot.lane.b32.xlu1 %v3889_v46, %s2711_s0  ;;  %v2163_v35 = vld [vmem:[%s2077_s1 + $0xc8] sm:$0x1]  ;;  %v1444_v36 = vld [vmem:[%s1443_s7] sm:$0x1]  ;;  %v1802_v22 = vld [vmem:[%s3861_s14 + $0x10] sm:$0xff] }
 0x95a   :  { %2436 = vmatprep.subr.mxu0 %v2705_v25  ;;  %v1449_v61 = vrot.slane %v2163_v35, 7 }
 0x95b   :  { %2437 = vmatpush3.msra.mxu0 %v1509_v1  ;;  %v1706_v1 = vld [vmem:[%s3860_s12] sm:$0xff] }
 0x95c   :  { %2460 = vmatprep.subr.mxu0 %v2705_v25  ;;  %1491 = vrot.lane.b32.xlu0 %v3714_v34, %s2710_s28  ;;  %v1452_v56 = vsel %vm349_vm2, %v1444_v36, %v1449_v61 }
 0x9c7   :  { %v1496_v38 = vpop.permute.xlu1 %1495 }
 0x9ca   :  { %v1488_v15 = vpop.permute.xlu0 %1487 }
 0x9cb   :  { %v1502_v37 = vsel %vm90_vm0, %v1452_v56, %v1488_v15  ;;  %v1500_v20 = vpop.permute.xlu1 %1499 }
 0x9ce   :  { %v1492_v17 = vpop.permute.xlu0 %1491 }
 0x9cf   :  { %v1504_v18 = vsel %vm402_vm3, %v1502_v37, %v1492_v17 }
 0x9d0   :  { %v1506_v19 = vsel %vm404_vm4, %v1504_v18, %v1496_v38 }
 0x9d1   :  { %v1508_v39 = vsel %vm406_vm5, %v1506_v19, %v1500_v20 }
 0x9d2   :  { %2439 = vmatmul.mubr.msk.f32.vlgmr.msra.gmra.mxu0 %vm418_vm6, %v1508_v39 }
 0x9d3   :  { %2464 = vmatprep.mubr.msk.f32.mxu0 %vm2707_vm13, %v2705_v25  ;;  %2461 = vmatpush3.msra.mxu0 %v1707_v0 }
 0x9d4   :  { %2462 = vmatprep.subr.mxu0 %v2705_v25 }
 0x9d5   :  { %2463 = vmatpush3.msra.mxu0 %v1706_v1 }
 0x9d6   :  { %2467 = vmatprep.subr.mxu0 %v2705_v25 }
 0xa92   :  { %v1589_v40 = vpop.f32.mrf.mxu0 }
 0xa93   :  { %v1590_v41 = vadd.f32 %v3069_v52, %v1589_v40  ;;  %v1629_v52 = vld [vmem:[%s3858_s10 + $0x28] sm:$0xff]  ;;  %v2715_v40 = vmov 1983009808  }
 0xa94   :  { %v2440_v42 = vpop.f32.mrf.mxu0  ;;  %2446 = vmatpush3.msra.mxu1 %v1629_v52 }
 0xa95   :  { %v2168_v27 = vmul.f32 -1.442695, %v1590_v41  ;;  %2447 = vmatprep.subr.mxu1 %v2705_v25  ;;  %v1986_v42 = vshrl.u32 %v282_v51, 7 }
 0xa96   :  { %2448 = vmatpush3.msra.mxu1 %v1628_v45 }
 0xa97   :  { %2586 = vpow2.f32 %v2168_v27  ;;  %2449 = vmatprep.subr.mxu1 %v2705_v25 }
 0xa98   :  { %2450 = vmatpush3.msra.mxu1 %v1627_v47 }
 0xa99   :  { %2451 = vmatprep.subr.mxu1 %v2705_v25 }
 0xa9a   :  { %2452 = vmatpush3.msra.mxu1 %v1626_v49 }
 0xa9b   :  { %2453 = vmatprep.subr.mxu1 %v2705_v25 }
 0xa9c   :  { %2454 = vmatpush3.msra.mxu1 %v1625_v8 }
 0xa9d   :  { %2455 = vmatprep.subr.mxu1 %v2705_v25 }
 0xa9e   :  { %2456 = vmatpush3.msra.mxu1 %v1624_v11 }
 0xa9f   :  { %2474 = vmatprep.subr.mxu1 %v2705_v25 }
 0xaa4   :  { %v2587_v43 = vpop.eup %2586 }
 0xaa5   :  { %v1596_v44 = vadd.f32 1.0, %v2587_v43 }
 0xaa7   :  { %2588 = vrcp.f32 %v1596_v44 }
 0xab4   :  { %v2589_v48 = vpop.eup %2588 }
 0xab5   :  { %1605 = vrot.lane.b32.xlu1 %v2589_v48, %s2712_s9  ;;  %1601 = vrot.lane.b32.xlu0 %v2589_v48, %s2713_s15  ;;  %v3755_v50 = vmul.f32 %v2589_v48, %v1452_v56 }
 0xab9   :  { %1610 = vrot.lane.b32.xlu0 %v3755_v50, %s2708_s23 }
 0xabd   :  { %1620 = vrot.lane.b32.xlu0 %v2165_v9, %s2709_s4 }
 0xb27   :  { %v1602_v12 = vpop.permute.xlu0 %1601  ;;  %v1606_v16 = vpop.permute.xlu1 %1605 }
 0xb28   :  { %v3774_v13 = vmul.f32 %v1602_v12, %v3714_v34  ;;  %v1608_v24 = vmul.f32 %v1606_v16, %v3889_v46  ;;  %v1803_v46 = vld [vmem:[%s3861_s14 + $0x18] sm:$0xff]  ;;  %v2714_v34 = vmov 0  }
 0xb29   :  { %2584 = vset.pattern.permute.xlu1 %v2714_v34  ;;  %2585 = vset.pattern.permute.xlu0 %v2714_v34 }
 0xb2a   :  { %1614 = vrot.lane.b32.xlu1 %v3774_v13, %s2710_s28 }
 0xb2b   :  { %v1611_v23 = vpop.permute.xlu0 %1610 }
 0xb2c   :  { %v1617_v57 = vsel %vm90_vm0, %v1608_v24, %v1611_v23 }
 0xb2f   :  { %v1621_v26 = vpop.permute.xlu0 %1620 }
 0xb9c   :  { %v1615_v59 = vpop.permute.xlu1 %1614 }
 0xb9d   :  { %v1618_v60 = vsel %vm402_vm3, %v1617_v57, %v1615_v59 }
 0xb9e   :  { %v1623_v21 = vsel %vm404_vm4, %v1618_v60, %v1621_v26 }
 0xb9f   :  { %2458 = vmatmul.mubr.msk.f32.vlgmr.msra.gmra.mxu1 %vm406_vm5, %v1623_v21 }
 0xba0   :  { %2475 = vmatpush3.msra.mxu1 %v1805_v29  ;;  %2486 = vmatprep.mubr.msk.f32.mxu1 %vm2707_vm13, %v2705_v25 }
 0xba1   :  { %2476 = vmatprep.subr.mxu1 %v2705_v25 }
 0xba2   :  { %2477 = vmatpush3.msra.mxu1 %v1804_v30 }
 0xba3   :  { %2478 = vmatprep.subr.mxu1 %v2705_v25 }
 0xba4   :  { %2479 = vmatpush3.msra.mxu1 %v1803_v46 }
 0xba5   :  { %2480 = vmatprep.subr.mxu1 %v2705_v25 }
 0xba6   :  { %2481 = vmatpush3.msra.mxu1 %v1802_v22 }
 0xba7   :  { %2482 = vmatprep.subr.mxu1 %v2705_v25 }
 0xba8   :  { %2483 = vmatpush3.msra.mxu1 %v1801_v31 }
 0xba9   :  { %2484 = vmatprep.subr.mxu1 %v2705_v25 }
 0xbaa   :  { %2485 = vmatpush3.msra.mxu1 %v1800_v63 }
 0xbab   :  { %2487 = vmatmul.mubr.msk.f32.vlgmr.msra.gmra.mxu1 %vm404_vm4, %v1618_v60 }
 0xc5f   :  { %v1701_v2 = vpop.f32.mrf.mxu1 }
 0xc60   :  { %v1702_v3 = vadd.f32 %v3074_v53, %v1701_v2  ;;  %v2166_v53 = vld [vmem:[%s3897_s30 + $0x18c] sm:$0x3] }
 0xc61   :  { %v2459_v4 = vpop.f32.mrf.mxu1 }
 0xc62   :  { %v1705_v5 = vmax.f32 %v1702_v3, 0.0 }
 0xc64   :  { %2465 = vmatmul.mubr.msk.f32.vlgmr.msra.gmra.mxu0 %vm90_vm0, %v1705_v5 }
 0xc65   :  { %2468 = vmatpush3.msra.mxu0 %v1807_v6  ;;  %2471 = vmatprep.mubr.msk.f32.mxu0 %vm2707_vm13, %v2705_v25 }
 0xc66   :  { %2469 = vmatprep.subr.mxu0 %v2705_v25 }
 0xc67   :  { %2470 = vmatpush3.msra.mxu0 %v1806_v7 }
 0xc68   :  { %2472 = vmatmul.mubr.msk.f32.vlgmr.msra.gmra.mxu0 %vm90_vm0, %v2166_v53  ;;  %vm1991_vm0 = vcmask 576514  }
 0xc69   :  { %vm1992_vm1 = vmor %vm1991_vm0, %vm1990_vm15 }
 0xc6b   :  { %v1950_v32 = vpop.f32.mrf.mxu1 }
 0xc6d   :  { %v2488_v33 = vpop.f32.mrf.mxu1 }
 0xd24   :  { %v1777_v35 = vpop.f32.mrf.mxu0 }
 0xd25   :  { %v1778_v61 = vadd.f32 %v3076_v54, %v1777_v35 }
 0xd26   :  { %v2466_v36 = vpop.f32.mrf.mxu0 }
 0xd27   :  { %v2171_v15 = vmul.f32 -1.442695, %v1778_v61 }
 0xd28   :  { %v1877_v56 = vpop.f32.mrf.mxu0 }
 0xd29   :  { %2590 = vpow2.f32 %v2171_v15  ;;  %v1951_v37 = vadd.f32 %v1950_v32, %v1877_v56 }
 0xd2a   :  { %v2473_v38 = vpop.f32.mrf.mxu0 }
 0xd2b   :  { %v1954_v17 = vadd.f32 %v3081_v55, %v1951_v37  ;;  %v1983_v55 = vunpack.c.l.s4 %v2715_v40 }
 0xd2d   :  { %2592 = vtanh.f32 %v1954_v17  ;;  %v1984_v41 = vunpack.c.0.s8 %v1983_v55 }
 0xd2f   :  { %v1987_v43 = vsub.s32 %v1984_v41, %v1986_v42 }
 0xd36   :  { %v2591_v25 = vpop.eup %2590 }
 0xd37   :  { %v1784_v18 = vadd.f32 1.0, %v2591_v25 }
 0xd39   :  { %2594 = vrcp.f32 %v1784_v18 }
 0xd3a   :  { %v2593_v19 = vpop.eup %2592 }
 0xd3b   :  { %1957 = vrot.lane.b32.xlu0 %v2593_v19, %s2713_s15 }
 0xd46   :  { %v2595_v20 = vpop.eup %2594 }
 0xd47   :  { %1795 = vperm.xlu1 %2584, %v2595_v20  }
 0xd4b   :  { %1961 = vrot.lane.b32.xlu1 %v2593_v19, %s2712_s9  ;;  %s2716_s9 = smov [#allocation10]  }
 0xd4c   :  { %s2000_s15 = sshll.u32 %s2716_s9, 4  ;;  %s2001_s15 = int_to_ptr.vmem [resolvable:$true] %s2000_s15 }
 0xd4d   :  { %s2620_s25 = scalar_lea.vmem %s2001_s15, 64  ;;  %p2625_p0 = scmp.lt.s32.totalorder %s2001_s15, %s2001_s15 }
 0xd4e   :  { %p2621_p13 = scmp.ne.s32.totalorder %s2001_s15, %s2620_s25  ;;  %p2626_p1 = scmp.lt.s32.totalorder %s2620_s25, %s2620_s25 }
 0xd50   :  { %p2627_p2 = por %p2626_p1, %p2625_p0 }
 0xd52   :  { %p2628_p3 = pnand %p2627_p2, %p2621_p13 }
 0xdad   :  { %v1958_v54 = vpop.permute.xlu0 %1957 }
 0xdae   :  { %v1960_v39 = vadd.f32 %v1958_v54, %v3755_v50 }
 0xdb0   :  { %1966 = vst.msk [vmem:[#allocation2 + $0xc6] sm:$0x1] %vm867_vm7, %v1960_v39 }
 0xdb1   :  { %1973 = vst.msk [vmem:[#allocation2 + $0x18d] sm:$0x2] %vm877_vm8, %v1960_v39 }
 0xdc2   :  { %v1796_v27 = vpop.permute.xlu1 %1795 }
 0xdc3   :  { %v1799_v44 = vsel %vm1788_vm14, %v1796_v27, %v3891_v10 }
 0xdc4   :  { %v1981_v62 = vcombine.low %v3890_v14, %v1799_v44 }
 0xdc6   :  { %v1962_v28 = vpop.permute.xlu1 %1961  ;;  %v1988_v52 = vrot.slane %v1981_v62, %v1987_v43 }
 0xdc7   :  { %v1964_v45 = vadd.f32 %v1962_v28, %v3774_v13 }
 0xdc8   :  { %1993 = vst.msk [vmem:[#allocation10] sm:$0xf] %vm1992_vm1, %v1988_v52 }
 0xdc9   :  { %1967 = vst.msk [vmem:[#allocation3 + $0xc6] sm:$0x1] %vm867_vm7, %v1964_v45 }
 0xdca   :  { %1974 = vst.msk [vmem:[#allocation3 + $0x18d] sm:$0x2] %vm877_vm8, %v1964_v45 }
 0xdcb   :  { %2631 = shalt.err (!%p2628_p3)
}
 0xdcc   :  { %s3898_s22 = sld [smem:[#allocation18_spill]] }
 0xdd2   :  { %2003 = dma.vmem_to_hbm [thread:$0]  %s2001_s15, 64, %s3898_s22, [#allocation11]  }
 0xdd3   :  { %2666 = dma.done.wait [#allocation11], 64  }
 0xdd4   :  { %2667 = vsyncadd [#allocation11], 4294967232 }
 0xdd5   :  { %2007 = vsyncpa [#allocation11], 1 }

</bundles_post_ra>
